<compile_context>
chip_gen: v6e
topology: v6e:2x2x1
jax: 0.10.0
libtpu: 0.0.40
codegen_flags: <defaults>
</compile_context>

<pallas_src>
import functools

import jax
import jax.numpy as jnp
from jax.experimental import pallas as pl
from jax.experimental.pallas import tpu as pltpu


def leff_kernel(x_ref, w1_ref, b1_ref, wdw_ref, bdw_ref, w2_ref, b2_ref, o_ref,
                *, approx_gelu, conv_bf16):
    # x_ref : (1, H, W, dim)  bf16 full image, VMEM-resident across the t axis
    # o_ref : (1, TH, W, dim) output row band for this grid step
    _, H, W, dim = x_ref.shape
    _, TH, _, _ = o_ref.shape
    hidden = w1_ref.shape[1]
    R = TH + 2                       # band + 1-row halo above / below
    N = R * W                        # flattened slab rows

    def act(v):
        # tanh GELU runs on the EUP slot (the VALU is the binding unit);
        # approx_gelu=False restores exact-erf torch.nn.GELU semantics.
        return jax.nn.gelu(v, approximate=approx_gelu)

    t = pl.program_id(1)
    n_t = pl.num_programs(1)
    row0 = t * TH                    # first image row of this band
    if TH % 8 == 0:
        row0 = pl.multiple_of(row0, 8)   # keep the band slice sublane-aligned

    # ---- gather the (TH+2)-row input slab: clamped halo rows, masked below.
    # x is already bf16 (wrapper cast), so these copies are half-width.
    top = jnp.maximum(row0 - 1, 0)
    bot = jnp.minimum(row0 + TH, H - 1)
    x_main = x_ref[0, pl.ds(row0, TH)]            # (TH, W, dim)
    x_top = x_ref[0, pl.ds(top, 1)]               # (1, W, dim)
    x_bot = x_ref[0, pl.ds(bot, 1)]               # (1, W, dim)
    x2 = jnp.concatenate([x_top, x_main, x_bot], axis=0).reshape(N, dim)

    # ---- linear1 (dim -> hidden) + GELU: bf16 MXU operands, f32 accumulate.
    h = jnp.dot(x2, w1_ref[...], preferred_element_type=jnp.float32) + b1_ref[...]
    h = act(h)                                     # (N, hidden) f32

    # ---- 1-lane masks, built without a modulo: band-row / column indices as
    # (N, 1) vectors from a (R, W, 1) iota; jnp.where broadcasts them across
    # the 128 hidden lanes.
    rowb = jax.lax.broadcasted_iota(jnp.int32, (R, W, 1), 0).reshape(N, 1)
    col = jax.lax.broadcasted_iota(jnp.int32, (R, W, 1), 1).reshape(N, 1)

    conv_dtype = jnp.bfloat16 if conv_bf16 else jnp.float32
    hc = h.astype(conv_dtype)
    # conv's H zero-padding: kill halo rows that fall outside the image.
    kill = ((rowb == 0) & (t == 0)) | ((rowb == R - 1) & (t == n_t - 1))
    hc = jnp.where(kill, 0.0, hc)

    # ---- depthwise 3x3 conv (stride 1, pad 1) + GELU.
    # j-1 / j+1 neighbours come from XLU rolls of the flattened slab; the
    # column-edge mask doubles as the conv's W zero-padding (the roll wrap
    # lands exactly on a masked edge column).  pltpu.roll requires a
    # non-negative shift, so the j+1 tap uses shift = N - 1 (== roll by -1).
    h_jm1 = jnp.where(col == 0, 0.0, pltpu.roll(hc, shift=1, axis=0))
    h_jp1 = jnp.where(col == W - 1, 0.0, pltpu.roll(hc, shift=N - 1, axis=0))
    shifted = (h_jm1, hc, h_jp1)                   # indexed by dj

    w_dw = wdw_ref[...].astype(conv_dtype)         # (9, hidden)
    acc = None
    for di in range(3):                            # sublane-aligned offsets 0, W, 2W
        base = di * W                              # (W % 8 == 0 keeps these views aligned)
        for dj in range(3):
            k = 3 * di + dj
            tap = shifted[dj][base:base + TH * W] * w_dw[k:k + 1]
            acc = tap if acc is None else acc + tap
    y = act(acc.astype(jnp.float32) + bdw_ref[...])    # (TH*W, hidden) f32

    # ---- linear2 (hidden -> dim).
    out = jnp.dot(y.astype(jnp.bfloat16), w2_ref[...],
                  preferred_element_type=jnp.float32) + b2_ref[...]

    # eca is nn.Identity() (use_eca=False) and drop=0.0 -> nothing else to do.
    # NOTE: dim=32 keeps this a masked 32-lane store.  The lane-dense
    # (B, H, W*dim) output layout would need an in-kernel lane relayout; since
    # the kernel is VALU-bound the masked stores are already hidden, so it was
    # not adopted (revisit together with input banding for v7x production
    # resolutions).
    o_ref[0] = out.reshape(TH, W, dim).astype(o_ref.dtype)


def _ceil_to(n, m):
    return -(-n // m) * m


def _vmem_block_bytes(shape, itemsize):
    """Rough padded-VMEM footprint of one block ((sublane,128)-tiled last 2 dims)."""
    sub = 8 * (4 // itemsize)        # 8 sublanes for f32, 16 for bf16
    lead = 1
    for d in shape[:-2]:
        lead *= d
    return lead * _ceil_to(shape[-2], sub) * _ceil_to(shape[-1], 128) * itemsize


@functools.partial(jax.jit, static_argnames=("row_tile", "approx_gelu", "conv_bf16"))
def leff_forward(x, w1, b1, wdw, bdw, w2, b2, *,
                 row_tile=32, approx_gelu=True, conv_bf16=False):
    B, H, W, dim = x.shape
    hidden = w1.shape[1]

    # Row-band height.  32-64 amortizes the ~0.35us/step serial grid overhead
    # and the 2-row halo recompute on v5e/v6e, and keeps M = (TH+2)*W large for
    # the MXU-unfriendly (K=32 / N=32) matmuls.  Falls back to the whole image
    # if row_tile does not divide H (production: pad H instead; on v7x a
    # full-image band can blow the 64 MiB VMEM budget).
    TH = min(row_tile, H) if row_tile else H
    if H % TH != 0:
        TH = H
    n_t = H // TH
    R = TH + 2

    # Lane-aligned parameter layouts + bf16 MXU operands.  Casting x to bf16
    # here (not in-kernel) halves the resident image's VMEM/HBM footprint and
    # makes every in-kernel slab copy half-width.
    x_b = x.astype(jnp.bfloat16)
    w1_b = w1.astype(jnp.bfloat16)
    w2_b = w2.astype(jnp.bfloat16)
    wdw9 = wdw.reshape(9, hidden)        # row-major 3x3 taps, lane-aligned
    b1_2 = b1.reshape(1, hidden)
    bdw_2 = bdw.reshape(1, hidden)
    b2_2 = b2.reshape(1, dim)

    # VMEM budget from the actual block sizes (+ double buffering + live
    # hidden-width intermediates) with headroom.  v5e's scoped default is only
    # 16 MiB so the explicit raise matters; cap well below v5e/v6e's 128 MiB
    # physical (drop the cap to ~56 MiB when tuning for v7x's 64 MiB/TC).
    vmem = 2 * _vmem_block_bytes((1, H, W, dim), 2)        # x block (bf16)
    vmem += 2 * _vmem_block_bytes((1, TH, W, dim), 4)      # out block (f32)
    vmem += 2 * (_vmem_block_bytes((dim, hidden), 2) +
                 _vmem_block_bytes((hidden, dim), 2) +
                 _vmem_block_bytes((9, hidden), 4) +
                 2 * _vmem_block_bytes((1, hidden), 4) +
                 _vmem_block_bytes((1, dim), 4))
    vmem += 8 * _vmem_block_bytes((R * W, hidden), 4)      # live intermediates
    vmem_limit = int(min(max(2 * vmem, 32 << 20), 96 << 20))

    kernel = functools.partial(leff_kernel,
                               approx_gelu=approx_gelu, conv_bf16=conv_bf16)

    return pl.pallas_call(
        kernel,
        out_shape=jax.ShapeDtypeStruct((B, H, W, dim), x.dtype),
        grid=(B, n_t),
        in_specs=[
            # Full image per batch element: its block index is constant along
            # the row-band axis, so it is DMA'd once per b and stays resident,
            # and the 1-row halos are re-gathered from it with clamped pl.ds
            # slices (no overlapping BlockSpecs, no jnp.pad).
            # For v7x at production resolutions, band this input as well
            # (memory_space=pl.ANY + manual make_async_copy of the TH+2-row
            # slab) -- the resident full-image block does not fit 64 MiB there.
            pl.BlockSpec((1, H, W, dim), lambda b, t: (b, 0, 0, 0)),
            pl.BlockSpec((dim, hidden), lambda b, t: (0, 0)),
            pl.BlockSpec((1, hidden), lambda b, t: (0, 0)),
            pl.BlockSpec((9, hidden), lambda b, t: (0, 0)),
            pl.BlockSpec((1, hidden), lambda b, t: (0, 0)),
            pl.BlockSpec((hidden, dim), lambda b, t: (0, 0)),
            pl.BlockSpec((1, dim), lambda b, t: (0, 0)),
        ],
        out_specs=pl.BlockSpec((1, TH, W, dim), lambda b, t: (b, t, 0, 0)),
        compiler_params=pltpu.CompilerParams(
            # Both axes are independent.  On v7x, if the profiler shows one
            # TensorCore idle, switch the batch axis to pltpu.CORE_PARALLEL.
            dimension_semantics=("parallel", "parallel"),
            vmem_limit_bytes=vmem_limit,
        ),
    )(x_b, w1_b, b1_2, wdw9, bdw_2, w2_b, b2_2)


def leff_reference(x, w1, b1, wdw, bdw, w2, b2, *, mxu_bf16=False, approx_gelu=False):
    """Pure-JAX reference.  mxu_bf16/approx_gelu mirror the kernel's numerics;
    both False gives the plain-f32, exact-erf (torch-equivalent) math."""
    B, H, W, dim = x.shape

    def act(v):
        return jax.nn.gelu(v, approximate=approx_gelu)

    def mxu_in(a):
        return a.astype(jnp.bfloat16) if mxu_bf16 else a

    h = jnp.einsum("bhwc,cd->bhwd", mxu_in(x), mxu_in(w1),
                   preferred_element_type=jnp.float32) + b1
    h = act(h)
    hp = jnp.pad(h, ((0, 0), (1, 1), (1, 1), (0, 0)))
    acc = None
    for di in range(3):
        for dj in range(3):
            tap = hp[:, di:di + H, dj:dj + W, :] * wdw[di, dj, :]
            acc = tap if acc is None else acc + tap
    y = act(acc + bdw)
    return jnp.einsum("bhwd,dc->bhwc", mxu_in(y), mxu_in(w2),
                      preferred_element_type=jnp.float32) + b2


if __name__ == "__main__":
    B, H, W = 2, 16, 16
    dim, hidden = 32, 128

    key = jax.random.PRNGKey(0)
    ks = jax.random.split(key, 7)

    # Deterministic synthetic parameters (shapes match the PyTorch module).
    x = jax.random.normal(ks[0], (B, H, W, dim), jnp.float32)
    w1 = jax.random.normal(ks[1], (dim, hidden), jnp.float32) * (1.0 / dim ** 0.5)
    b1 = jax.random.normal(ks[2], (hidden,), jnp.float32) * 0.01
    # torch Conv2d(hidden, hidden, groups=hidden, k=3) weight is (hidden,1,3,3);
    # stored here channel-last as (3, 3, hidden).
    wdw = jax.random.normal(ks[3], (3, 3, hidden), jnp.float32) * (1.0 / 3.0)
    bdw = jax.random.normal(ks[4], (hidden,), jnp.float32) * 0.01
    w2 = jax.random.normal(ks[5], (hidden, dim), jnp.float32) * (1.0 / hidden ** 0.5)
    b2 = jax.random.normal(ks[6], (dim,), jnp.float32) * 0.01

    # (a) default config (tanh-GELU on the EUP, f32 conv stage); row_tile=8 ->
    #     grid (2, 2), exercising the multi-band halo path.
    out = leff_forward(x, w1, b1, wdw, bdw, w2, b2, row_tile=8)
    out = jax.block_until_ready(out)
    assert out.shape == (B, H, W, dim)
    ref_a = leff_reference(x, w1, b1, wdw, bdw, w2, b2,
                           mxu_bf16=True, approx_gelu=True)
    assert jnp.allclose(out, ref_a, atol=1e-3, rtol=1e-3), \
        "mismatch vs precision-matched JAX reference (default config)"

    # (b) bf16 depthwise-conv stage (v6e/v7x option), same GELU.
    out_b = leff_forward(x, w1, b1, wdw, bdw, w2, b2, row_tile=8,
                         approx_gelu=True, conv_bf16=True)
    out_b = jax.block_until_ready(out_b)
    assert jnp.allclose(out_b, ref_a, atol=5e-2, rtol=5e-2), \
        "bf16 conv-stage deviation too large"

    # Sanity bound vs the full-f32 exact-GELU (torch-equivalent) math: only the
    # bf16 MXU operands and the tanh-GELU approximation separate the two.
    ref_f32 = leff_reference(x, w1, b1, wdw, bdw, w2, b2,
                             mxu_bf16=False, approx_gelu=False)
    max_err = float(jnp.max(jnp.abs(out - ref_f32)))
    assert max_err < 0.3, f"deviation vs exact f32 reference too large: {max_err}"

    print("KERNEL_OK")
</pallas_src>

<mosaic_0001>
module attributes {stable_mosaic.version = 11 : i64} {
  func.func @leff_kernel(%arg0: i32, %arg1: i32, %arg2: memref<1x16x16x32xbf16, #tpu.memory_space<vmem>>, %arg3: memref<32x128xbf16, #tpu.memory_space<vmem>>, %arg4: memref<1x128xf32, #tpu.memory_space<vmem>>, %arg5: memref<9x128xf32, #tpu.memory_space<vmem>>, %arg6: memref<1x128xf32, #tpu.memory_space<vmem>>, %arg7: memref<128x32xbf16, #tpu.memory_space<vmem>>, %arg8: memref<1x32xf32, #tpu.memory_space<vmem>>, %arg9: memref<1x8x16x32xf32, #tpu.memory_space<vmem>>) attributes {dimension_semantics = [#tpu.dimension_semantics<parallel>, #tpu.dimension_semantics<parallel>], iteration_bounds = array<i64: 2, 2>, scalar_prefetch = 0 : i64, scratch_operands = 0 : i64, tpu.core_type = #tpu.core_type<tc>, window_params = [{transform_indices = @transform_0, window_bounds = array<i64: 1, 16, 16, 32>}, {pipeline_mode = #tpu.pipeline_mode<synchronous>, transform_indices = @transform_1, window_bounds = array<i64: 32, 128>}, {pipeline_mode = #tpu.pipeline_mode<synchronous>, transform_indices = @transform_2, window_bounds = array<i64: 1, 128>}, {pipeline_mode = #tpu.pipeline_mode<synchronous>, transform_indices = @transform_3, window_bounds = array<i64: 9, 128>}, {pipeline_mode = #tpu.pipeline_mode<synchronous>, transform_indices = @transform_4, window_bounds = array<i64: 1, 128>}, {pipeline_mode = #tpu.pipeline_mode<synchronous>, transform_indices = @transform_5, window_bounds = array<i64: 128, 32>}, {pipeline_mode = #tpu.pipeline_mode<synchronous>, transform_indices = @transform_6, window_bounds = array<i64: 1, 32>}, {transform_indices = @transform_7, window_bounds = array<i64: 1, 8, 16, 32>}]} {
    %c8_i32 = arith.constant 8 : i32
    %0 = arith.muli %arg1, %c8_i32 : i32
    %1 = tpu.assume_multiple %0, 8 : i32
    %c1_i32 = arith.constant 1 : i32
    %2 = arith.subi %1, %c1_i32 : i32
    %c0_i32 = arith.constant 0 : i32
    %3 = arith.maxsi %2, %c0_i32 : i32
    %c8_i32_0 = arith.constant 8 : i32
    %4 = arith.addi %1, %c8_i32_0 : i32
    %c15_i32 = arith.constant 15 : i32
    %5 = arith.minsi %4, %c15_i32 : i32
    %c0 = arith.constant 0 : index
    %6 = arith.index_cast %1 : i32 to index
    %c0_1 = arith.constant 0 : index
    %c0_2 = arith.constant 0 : index
    %7 = vector.load %arg2[%c0, %6, %c0_1, %c0_2] : memref<1x16x16x32xbf16, #tpu.memory_space<vmem>>, vector<1x8x16x32xbf16>
    %8 = vector.shape_cast %7 : vector<1x8x16x32xbf16> to vector<8x16x32xbf16>
    %c0_3 = arith.constant 0 : index
    %9 = arith.index_cast %3 : i32 to index
    %c0_4 = arith.constant 0 : index
    %c0_5 = arith.constant 0 : index
    %10 = vector.load %arg2[%c0_3, %9, %c0_4, %c0_5] : memref<1x16x16x32xbf16, #tpu.memory_space<vmem>>, vector<1x1x16x32xbf16>
    %11 = vector.shape_cast %10 : vector<1x1x16x32xbf16> to vector<1x16x32xbf16>
    %c0_6 = arith.constant 0 : index
    %12 = arith.index_cast %5 : i32 to index
    %c0_7 = arith.constant 0 : index
    %c0_8 = arith.constant 0 : index
    %13 = vector.load %arg2[%c0_6, %12, %c0_7, %c0_8] : memref<1x16x16x32xbf16, #tpu.memory_space<vmem>>, vector<1x1x16x32xbf16>
    %14 = vector.shape_cast %13 : vector<1x1x16x32xbf16> to vector<1x16x32xbf16>
    %15 = tpu.concatenate %11, %8, %14 in 0 : vector<1x16x32xbf16>, vector<8x16x32xbf16>, vector<1x16x32xbf16> -> vector<10x16x32xbf16>
    %16 = vector.shape_cast %15 : vector<10x16x32xbf16> to vector<160x32xbf16>
    %c0_9 = arith.constant 0 : index
    %c0_10 = arith.constant 0 : index
    %17 = vector.load %arg3[%c0_9, %c0_10] : memref<32x128xbf16, #tpu.memory_space<vmem>>, vector<32x128xbf16>
    %cst = arith.constant dense<0.000000e+00> : vector<160x128xf32>
    %18 = tpu.matmul %16, %17, %cst {dimension_numbers = #tpu.dot_dimension_numbers<[1], [0], [0], [1], [0, 0, 1, 1], [], []>} : vector<160x32xbf16>, vector<32x128xbf16>, vector<160x128xf32> -> vector<160x128xf32>
    %c0_11 = arith.constant 0 : index
    %c0_12 = arith.constant 0 : index
    %19 = vector.load %arg4[%c0_11, %c0_12] : memref<1x128xf32, #tpu.memory_space<vmem>>, vector<1x128xf32>
    %20 = vector.broadcast %19 : vector<1x128xf32> to vector<160x128xf32>
    %21 = arith.addf %18, %20 : vector<160x128xf32>
    %22 = arith.mulf %21, %21 : vector<160x128xf32>
    %23 = arith.mulf %21, %22 : vector<160x128xf32>
    %cst_13 = arith.constant 4.471500e-02 : f32
    %24 = vector.broadcast %cst_13 : f32 to vector<160x128xf32>
    %25 = arith.mulf %24, %23 : vector<160x128xf32>
    %26 = arith.addf %21, %25 : vector<160x128xf32>
    %cst_14 = arith.constant 0.797884583 : f32
    %27 = vector.broadcast %cst_14 : f32 to vector<160x128xf32>
    %28 = arith.mulf %27, %26 : vector<160x128xf32>
    %29 = math.tanh %28 : vector<160x128xf32>
    %cst_15 = arith.constant 1.000000e+00 : f32
    %30 = vector.broadcast %cst_15 : f32 to vector<160x128xf32>
    %31 = arith.addf %30, %29 : vector<160x128xf32>
    %cst_16 = arith.constant 5.000000e-01 : f32
    %32 = vector.broadcast %cst_16 : f32 to vector<160x128xf32>
    %33 = arith.mulf %32, %31 : vector<160x128xf32>
    %34 = arith.mulf %21, %33 : vector<160x128xf32>
    %35 = tpu.iota {dimensions = array<i32: 0>} : vector<10x16x1xi32>
    %36 = vector.shape_cast %35 : vector<10x16x1xi32> to vector<160x1xi32>
    %37 = tpu.iota {dimensions = array<i32: 1>} : vector<10x16x1xi32>
    %38 = vector.shape_cast %37 : vector<10x16x1xi32> to vector<160x1xi32>
    %c0_i32_17 = arith.constant 0 : i32
    %39 = vector.broadcast %c0_i32_17 : i32 to vector<160x1xi32>
    %40 = arith.cmpi eq, %36, %39 : vector<160x1xi32>
    %c0_i32_18 = arith.constant 0 : i32
    %41 = arith.cmpi eq, %arg1, %c0_i32_18 : i32
    %42 = vector.broadcast %41 : i1 to vector<160x1xi1>
    %43 = arith.andi %40, %42 : vector<160x1xi1>
    %c9_i32 = arith.constant 9 : i32
    %44 = vector.broadcast %c9_i32 : i32 to vector<160x1xi32>
    %45 = arith.cmpi eq, %36, %44 : vector<160x1xi32>
    %c1_i32_19 = arith.constant 1 : i32
    %46 = arith.cmpi eq, %arg1, %c1_i32_19 : i32
    %47 = vector.broadcast %46 : i1 to vector<160x1xi1>
    %48 = arith.andi %45, %47 : vector<160x1xi1>
    %49 = arith.ori %43, %48 : vector<160x1xi1>
    %cst_20 = arith.constant 0.000000e+00 : f32
    %50 = vector.shape_cast %49 : vector<160x1xi1> to vector<160x1xi1>
    %51 = vector.broadcast %50 : vector<160x1xi1> to vector<160x128xi1>
    %52 = vector.broadcast %cst_20 : f32 to vector<160x128xf32>
    %53 = arith.select %51, %52, %34 : vector<160x128xi1>, vector<160x128xf32>
    %c0_i32_21 = arith.constant 0 : i32
    %54 = vector.broadcast %c0_i32_21 : i32 to vector<160x1xi32>
    %55 = arith.cmpi eq, %38, %54 : vector<160x1xi32>
    %c1_i32_22 = arith.constant 1 : i32
    %56 = tpu.dynamic_rotate %53 by %c1_i32_22 dim 0 : vector<160x128xf32>, i32 -> vector<160x128xf32>
    %cst_23 = arith.constant 0.000000e+00 : f32
    %57 = vector.shape_cast %55 : vector<160x1xi1> to vector<160x1xi1>
    %58 = vector.broadcast %57 : vector<160x1xi1> to vector<160x128xi1>
    %59 = vector.broadcast %cst_23 : f32 to vector<160x128xf32>
    %60 = arith.select %58, %59, %56 : vector<160x128xi1>, vector<160x128xf32>
    %c15_i32_24 = arith.constant 15 : i32
    %61 = vector.broadcast %c15_i32_24 : i32 to vector<160x1xi32>
    %62 = arith.cmpi eq, %38, %61 : vector<160x1xi32>
    %c159_i32 = arith.constant 159 : i32
    %63 = tpu.dynamic_rotate %53 by %c159_i32 dim 0 : vector<160x128xf32>, i32 -> vector<160x128xf32>
    %cst_25 = arith.constant 0.000000e+00 : f32
    %64 = vector.shape_cast %62 : vector<160x1xi1> to vector<160x1xi1>
    %65 = vector.broadcast %64 : vector<160x1xi1> to vector<160x128xi1>
    %66 = vector.broadcast %cst_25 : f32 to vector<160x128xf32>
    %67 = arith.select %65, %66, %63 : vector<160x128xi1>, vector<160x128xf32>
    %c0_26 = arith.constant 0 : index
    %c0_27 = arith.constant 0 : index
    %68 = vector.load %arg5[%c0_26, %c0_27] : memref<9x128xf32, #tpu.memory_space<vmem>>, vector<9x128xf32>
    %69 = vector.extract_strided_slice %60 {offsets = [0, 0], sizes = [128, 128], strides = [1, 1]} : vector<160x128xf32> to vector<128x128xf32>
    %70 = vector.extract_strided_slice %68 {offsets = [0, 0], sizes = [1, 128], strides = [1, 1]} : vector<9x128xf32> to vector<1x128xf32>
    %71 = vector.broadcast %70 : vector<1x128xf32> to vector<128x128xf32>
    %72 = arith.mulf %69, %71 : vector<128x128xf32>
    %73 = vector.extract_strided_slice %53 {offsets = [0, 0], sizes = [128, 128], strides = [1, 1]} : vector<160x128xf32> to vector<128x128xf32>
    %74 = vector.extract_strided_slice %68 {offsets = [1, 0], sizes = [1, 128], strides = [1, 1]} : vector<9x128xf32> to vector<1x128xf32>
    %75 = vector.broadcast %74 : vector<1x128xf32> to vector<128x128xf32>
    %76 = arith.mulf %73, %75 : vector<128x128xf32>
    %77 = arith.addf %72, %76 : vector<128x128xf32>
    %78 = vector.extract_strided_slice %67 {offsets = [0, 0], sizes = [128, 128], strides = [1, 1]} : vector<160x128xf32> to vector<128x128xf32>
    %79 = vector.extract_strided_slice %68 {offsets = [2, 0], sizes = [1, 128], strides = [1, 1]} : vector<9x128xf32> to vector<1x128xf32>
    %80 = vector.broadcast %79 : vector<1x128xf32> to vector<128x128xf32>
    %81 = arith.mulf %78, %80 : vector<128x128xf32>
    %82 = arith.addf %77, %81 : vector<128x128xf32>
    %83 = vector.extract_strided_slice %60 {offsets = [16, 0], sizes = [128, 128], strides = [1, 1]} : vector<160x128xf32> to vector<128x128xf32>
    %84 = vector.extract_strided_slice %68 {offsets = [3, 0], sizes = [1, 128], strides = [1, 1]} : vector<9x128xf32> to vector<1x128xf32>
    %85 = vector.broadcast %84 : vector<1x128xf32> to vector<128x128xf32>
    %86 = arith.mulf %83, %85 : vector<128x128xf32>
    %87 = arith.addf %82, %86 : vector<128x128xf32>
    %88 = vector.extract_strided_slice %53 {offsets = [16, 0], sizes = [128, 128], strides = [1, 1]} : vector<160x128xf32> to vector<128x128xf32>
    %89 = vector.extract_strided_slice %68 {offsets = [4, 0], sizes = [1, 128], strides = [1, 1]} : vector<9x128xf32> to vector<1x128xf32>
    %90 = vector.broadcast %89 : vector<1x128xf32> to vector<128x128xf32>
    %91 = arith.mulf %88, %90 : vector<128x128xf32>
    %92 = arith.addf %87, %91 : vector<128x128xf32>
    %93 = vector.extract_strided_slice %67 {offsets = [16, 0], sizes = [128, 128], strides = [1, 1]} : vector<160x128xf32> to vector<128x128xf32>
    %94 = vector.extract_strided_slice %68 {offsets = [5, 0], sizes = [1, 128], strides = [1, 1]} : vector<9x128xf32> to vector<1x128xf32>
    %95 = vector.broadcast %94 : vector<1x128xf32> to vector<128x128xf32>
    %96 = arith.mulf %93, %95 : vector<128x128xf32>
    %97 = arith.addf %92, %96 : vector<128x128xf32>
    %98 = vector.extract_strided_slice %60 {offsets = [32, 0], sizes = [128, 128], strides = [1, 1]} : vector<160x128xf32> to vector<128x128xf32>
    %99 = vector.extract_strided_slice %68 {offsets = [6, 0], sizes = [1, 128], strides = [1, 1]} : vector<9x128xf32> to vector<1x128xf32>
    %100 = vector.broadcast %99 : vector<1x128xf32> to vector<128x128xf32>
    %101 = arith.mulf %98, %100 : vector<128x128xf32>
    %102 = arith.addf %97, %101 : vector<128x128xf32>
    %103 = vector.extract_strided_slice %53 {offsets = [32, 0], sizes = [128, 128], strides = [1, 1]} : vector<160x128xf32> to vector<128x128xf32>
    %104 = vector.extract_strided_slice %68 {offsets = [7, 0], sizes = [1, 128], strides = [1, 1]} : vector<9x128xf32> to vector<1x128xf32>
    %105 = vector.broadcast %104 : vector<1x128xf32> to vector<128x128xf32>
    %106 = arith.mulf %103, %105 : vector<128x128xf32>
    %107 = arith.addf %102, %106 : vector<128x128xf32>
    %108 = vector.extract_strided_slice %67 {offsets = [32, 0], sizes = [128, 128], strides = [1, 1]} : vector<160x128xf32> to vector<128x128xf32>
    %109 = vector.extract_strided_slice %68 {offsets = [8, 0], sizes = [1, 128], strides = [1, 1]} : vector<9x128xf32> to vector<1x128xf32>
    %110 = vector.broadcast %109 : vector<1x128xf32> to vector<128x128xf32>
    %111 = arith.mulf %108, %110 : vector<128x128xf32>
    %112 = arith.addf %107, %111 : vector<128x128xf32>
    %c0_28 = arith.constant 0 : index
    %c0_29 = arith.constant 0 : index
    %113 = vector.load %arg6[%c0_28, %c0_29] : memref<1x128xf32, #tpu.memory_space<vmem>>, vector<1x128xf32>
    %114 = vector.broadcast %113 : vector<1x128xf32> to vector<128x128xf32>
    %115 = arith.addf %112, %114 : vector<128x128xf32>
    %116 = arith.mulf %115, %115 : vector<128x128xf32>
    %117 = arith.mulf %115, %116 : vector<128x128xf32>
    %cst_30 = arith.constant 4.471500e-02 : f32
    %118 = vector.broadcast %cst_30 : f32 to vector<128x128xf32>
    %119 = arith.mulf %118, %117 : vector<128x128xf32>
    %120 = arith.addf %115, %119 : vector<128x128xf32>
    %cst_31 = arith.constant 0.797884583 : f32
    %121 = vector.broadcast %cst_31 : f32 to vector<128x128xf32>
    %122 = arith.mulf %121, %120 : vector<128x128xf32>
    %123 = math.tanh %122 : vector<128x128xf32>
    %cst_32 = arith.constant 1.000000e+00 : f32
    %124 = vector.broadcast %cst_32 : f32 to vector<128x128xf32>
    %125 = arith.addf %124, %123 : vector<128x128xf32>
    %cst_33 = arith.constant 5.000000e-01 : f32
    %126 = vector.broadcast %cst_33 : f32 to vector<128x128xf32>
    %127 = arith.mulf %126, %125 : vector<128x128xf32>
    %128 = arith.mulf %115, %127 : vector<128x128xf32>
    %129 = arith.truncf %128 : vector<128x128xf32> to vector<128x128xbf16>
    %c0_34 = arith.constant 0 : index
    %c0_35 = arith.constant 0 : index
    %130 = vector.load %arg7[%c0_34, %c0_35] : memref<128x32xbf16, #tpu.memory_space<vmem>>, vector<128x32xbf16>
    %cst_36 = arith.constant dense<0.000000e+00> : vector<128x32xf32>
    %131 = tpu.matmul %129, %130, %cst_36 {dimension_numbers = #tpu.dot_dimension_numbers<[1], [0], [0], [1], [0, 0, 1, 1], [], []>} : vector<128x128xbf16>, vector<128x32xbf16>, vector<128x32xf32> -> vector<128x32xf32>
    %c0_37 = arith.constant 0 : index
    %c0_38 = arith.constant 0 : index
    %132 = vector.load %arg8[%c0_37, %c0_38] : memref<1x32xf32, #tpu.memory_space<vmem>>, vector<1x32xf32>
    %133 = vector.broadcast %132 : vector<1x32xf32> to vector<128x32xf32>
    %134 = arith.addf %131, %133 : vector<128x32xf32>
    %135 = vector.shape_cast %134 : vector<128x32xf32> to vector<8x16x32xf32>
    %c0_39 = arith.constant 0 : index
    %c0_40 = arith.constant 0 : index
    %c0_41 = arith.constant 0 : index
    %c0_42 = arith.constant 0 : index
    %136 = vector.load %arg9[%c0_39, %c0_40, %c0_41, %c0_42] : memref<1x8x16x32xf32, #tpu.memory_space<vmem>>, vector<1x8x16x32xf32>
    %137 = vector.shape_cast %136 : vector<1x8x16x32xf32> to vector<8x16x32xf32>
    %138 = vector.shape_cast %135 : vector<8x16x32xf32> to vector<1x8x16x32xf32>
    tpu.vector_store %arg9[%c0_39, %c0_40, %c0_41, %c0_42], %138 {strides = array<i32>} : memref<1x8x16x32xf32, #tpu.memory_space<vmem>>, vector<1x8x16x32xf32>,
    return
  }
  func.func @transform_0(%arg0: i32, %arg1: i32) -> (i32, i32, i32, i32) {
    %c0_i32 = arith.constant 0 : i32
    %c0_i32_0 = arith.constant 0 : i32
    %c0_i32_1 = arith.constant 0 : i32
    %c0_i32_2 = arith.constant 0 : i32
    return %arg0, %c0_i32, %c0_i32_0, %c0_i32_1 : i32, i32, i32, i32
  }
  func.func @transform_1(%arg0: i32, %arg1: i32) -> (i32, i32) {
    %c0_i32 = arith.constant 0 : i32
    %c0_i32_0 = arith.constant 0 : i32
    %c0_i32_1 = arith.constant 0 : i32
    return %c0_i32, %c0_i32_0 : i32, i32
  }
  func.func @transform_2(%arg0: i32, %arg1: i32) -> (i32, i32) {
    %c0_i32 = arith.constant 0 : i32
    %c0_i32_0 = arith.constant 0 : i32
    %c0_i32_1 = arith.constant 0 : i32
    return %c0_i32, %c0_i32_0 : i32, i32
  }
  func.func @transform_3(%arg0: i32, %arg1: i32) -> (i32, i32) {
    %c0_i32 = arith.constant 0 : i32
    %c0_i32_0 = arith.constant 0 : i32
    %c0_i32_1 = arith.constant 0 : i32
    return %c0_i32, %c0_i32_0 : i32, i32
  }
  func.func @transform_4(%arg0: i32, %arg1: i32) -> (i32, i32) {
    %c0_i32 = arith.constant 0 : i32
    %c0_i32_0 = arith.constant 0 : i32
    %c0_i32_1 = arith.constant 0 : i32
    return %c0_i32, %c0_i32_0 : i32, i32
  }
  func.func @transform_5(%arg0: i32, %arg1: i32) -> (i32, i32) {
    %c0_i32 = arith.constant 0 : i32
    %c0_i32_0 = arith.constant 0 : i32
    %c0_i32_1 = arith.constant 0 : i32
    return %c0_i32, %c0_i32_0 : i32, i32
  }
  func.func @transform_6(%arg0: i32, %arg1: i32) -> (i32, i32) {
    %c0_i32 = arith.constant 0 : i32
    %c0_i32_0 = arith.constant 0 : i32
    %c0_i32_1 = arith.constant 0 : i32
    return %c0_i32, %c0_i32_0 : i32, i32
  }
  func.func @transform_7(%arg0: i32, %arg1: i32) -> (i32, i32, i32, i32) {
    %c0_i32 = arith.constant 0 : i32
    %c0_i32_0 = arith.constant 0 : i32
    %c0_i32_1 = arith.constant 0 : i32
    return %arg0, %arg1, %c0_i32, %c0_i32_0 : i32, i32, i32, i32
  }
}

</mosaic_0001>

<bundles_post_ra>
// kernel: leff_forward.1
= control target key start
LH: loop header
LB: loop body
LE: loop exit
PB: predicated region body
PF: predicated region fallthrough
CT: control target
= control target key end

     0   :  { %12 = vsyncpa [#allocation3], 0  ;;  %s3440_s0 = inlined_call_operand.vmem [shape: bf16[2,16,16,32], index: 0, kind: input, shape index: {}]   ;;  %s3441_s1 = inlined_call_operand.vmem [shape: bf16[32,128], index: 1, kind: input, shape index: {}]   ;;  %s3442_s2 = inlined_call_operand.vmem [shape: f32[1,128], index: 2, kind: input, shape index: {}]   ;;  %s3443_s3 = inlined_call_operand.vmem [shape: f32[9,128], index: 3, kind: input, shape index: {}]   ;;  %s3444_s4 = inlined_call_operand.vmem [shape: f32[1,128], index: 4, kind: input, shape index: {}]   ;;  %s3445_s5 = inlined_call_operand.vmem [shape: bf16[128,32], index: 5, kind: input, shape index: {}]   ;;  %s3446_s6 = inlined_call_operand.vmem [shape: f32[1,32], index: 6, kind: input, shape index: {}]   ;;  %s3447_s7 = inlined_call_operand.hbm [shape: f32[2,16,16,32], index: 7, kind: output, shape index: {}]  }
   0x1   :  { %14 = vsyncpa [#allocation3 + $0x1], 0  ;;  %s2112_s24 = smov 0   ;;  %s2114_s25 = smov 0  }
   0x2   :  { %s2116_s26 = smov 0   ;;  %s2118_s27 = smov 0  }
   0x3   :  { %s2120_s28 = smov 0   ;;  %s2122_s29 = smov 0  }
   0x4   :  { %s2124_s30 = smov 0   ;;  %s2126_s8 = smov 0  }
   0x5 LB: > { %s1647_s9 = sadd.s32 4294967295, %s2067_s8   ;;  %s1648_s10 = sadd.s32 4294967294, %s2067_s8   ;;  %s2067_s8 = sphi %s2126_s8, %s20_s8   ;;  %s2063_s30 = sphi %s2124_s30, %s3595_s30   ;;  %s2059_s29 = sphi %s2122_s29, %s3594_s29   ;;  %s2055_s28 = sphi %s2120_s28, %s3593_s28   ;;  %s2051_s27 = sphi %s2118_s27, %s3592_s27   ;;  %s2047_s26 = sphi %s2116_s26, %s3591_s26   ;;  %s2043_s25 = sphi %s2114_s25, %s3590_s25   ;;  %s2039_s24 = sphi %s2112_s24, %s3589_s24  }
   0x6   : > { %s29_s11 = sadd.s32 1, %s2059_s29  ;;  %s32_s12 = sadd.s32 1, %s2063_s30 }
   0x7   : > { %p30_p0 = scmp.ge.s32.totalorder %s29_s11, 2  ;;  %p203_p1 = scmp.ne.s32.totalorder %s2047_s26, %s2043_s25 }
   0x8   : > { %p204_p2 = scmp.eq.s32.totalorder %s1647_s9, 3  ;;  %p209_p5 = scmp.ne.s32.totalorder %s2043_s25, %s2039_s24 }
   0x9   : > { %s3597_s11 = smov (%p30_p0, %s29_s11), 0  ;;  %s3599_s12 = smov (!%p30_p0, %s32_s12), %s2063_s30 }
   0xa   : > { %3477 = sst [smem:[#allocation5_spill]] %s3597_s11  ;;  %s189_s13 = ssub.s32 %s2059_s29, %s3597_s11 }
   0xb   : > { %p2163_p3 = por %p204_p2, %p203_p1  ;;  %p34_p4 = scmp.ge.s32.totalorder %s3599_s12, 2 }
   0xc   : > { %p210_p6 = scmp.eq.s32.totalorder %s1648_s10, 3  ;;  %p1651_p7 = scmp.ge.s32.totalorder %s2067_s8, 1 }
   0xd   : > { %s3601_s12 = smov (%p34_p4, %s3599_s12), 0  ;;  %p254_p9 = scmp.lt.s32.totalorder %s2067_s8, 5 }
   0xe   : > { %3479 = sst [smem:[#allocation6_spill]] %s3601_s12  ;;  %p2172_p8 = por %p210_p6, %p209_p5 }
   0xf   : > { %s188_s16 = ssub.s32 %s2063_s30, %s3601_s12  ;;  %s193_s17 = sadd.s32 1, %s2047_s26 }
  0x10   : > { %s190_s18 = sor.u32 %s189_s13, %s188_s16  ;;  %p255_p10 = pnand %p1651_p7, %p254_p9 }
  0x11   : > { %p191_p11 = scmp.eq.s32.totalorder %s190_s18, 0 }
  0x12   : > { %258 = sbr.rel (%p255_p10) target bundleno = 661 (0x295), region = 48 }
  0x13   : > { %s2181_s19 = scalar_select %p191_p11, %s2047_s26, %s193_s17  }
  0x17   : > { %v1883_v0 = vld [vmem:[%s3441_s1 + $0x8] sm:$0xff]   ;;  %p286_p12 = scmp.lt.s32.totalorder %s2055_s28, 1  ;;  %v1884_v1 = vld [vmem:[%s3441_s1] sm:$0xff]   ;;  %s1655_s9 = sshll.u32 %s2051_s27, 3  ;;  %vm402_vm0 = vcmask 261120   ;;  %v1895_v12 = vld [vmem:[%s3445_s5 + $0x38] sm:$0xff]   ;;  %v726_v15 = vlaneseq }
  0x18   : > { %1738 = vmatprep.subr.bf16.mxu0 %v1883_v0  ;;  %s1656_s13 = sadd.s32 4294967295, %s1655_s9  ;;  %s297_s16 = sadd.s32 8, %s1655_s9  ;;  %1794 = vmatprep.subr.bf16.mxu1 %v1895_v12  ;;  %v1896_v13 = vld [vmem:[%s3445_s5 + $0x30] sm:$0xff]   ;;  %v1897_v14 = vld [vmem:[%s3445_s5 + $0x28] sm:$0xff]   ;;  %v2218_v16 = vld [vmem:[%s3442_s2] ss:$0 sm:$0xff] }
  0x19   : > { %s287_s10 = scalar_select %p286_p12, %s2055_s28, 1  ;;  %1739 = vmatpush3.bf16.msra.mxu0 %v1883_v0  ;;  %1802 = vmatpush3.bf16.msra.mxu1 %v1895_v12  ;;  %v1898_v17 = vld [vmem:[%s3445_s5 + $0x20] sm:$0xff]   ;;  %v2223_v19 = vshrl.u32 %v726_v15, 7  ;;  %v1899_v22 = vld [vmem:[%s3445_s5 + $0x18] sm:$0xff]   ;;  %v1900_v34 = vld [vmem:[%s3445_s5 + $0x10] sm:$0xff]  }
  0x1a   : > { %1740 = vmatprep.subr.bf16.mxu0 %v1884_v1  ;;  %p295_p13 = scmp.gt.s32.totalorder %s1656_s13, 0  ;;  %p298_p0 = scmp.lt.s32.totalorder %s297_s16, 15  ;;  %1795 = vmatprep.subr.bf16.mxu1 %v1896_v13  ;;  %v2241_v28 = vld [vmem:[%s3443_s3] sm:$0xff]  ;;  %v1901_v52 = vld [vmem:[%s3445_s5 + $0x8] sm:$0xff]  }
  0x1b   : > { %s1704_s17 = sshll.u32 %s287_s10, 7  ;;  %s1706_s12 = sshll.u32 %s2051_s27, 6  ;;  %v903_v25 = vsub.s32 1, %v2223_v19  ;;  %v1011_v31 = vsub.s32 4, %v2223_v19  ;;  %v883_v32 = vsub.s32 0, %v2223_v19  ;;  %v939_v40 = vsub.s32 2, %v2223_v19 }
  0x1c   : > { %s290_s21 = scalar_lea.vmem %s3440_s0, %s1704_s17  ;;  %s3603_s13 = smov (!%p295_p13, %s1656_s13), 0  ;;  %v1047_v41 = vsub.s32 5, %v2223_v19  ;;  %v975_v49 = vsub.s32 3, %v2223_v19  ;;  %vm767_vm2 = vcmp.lt.s32.totalorder %v2223_v19, 1  ;;  %vm834_vm3 = vcmp.lt.s32.totalorder %v2223_v19, 7 }
  0x1d   : > { %1741 = vmatpush3.bf16.msra.mxu0 %v1884_v1  ;;  %s1707_s11 = sshll.u32 %s3603_s13, 3  ;;  %s302_s22 = scalar_lea.vmem %s290_s21, %s1706_s12  ;;  %1803 = vmatpush3.bf16.msra.mxu1 %v1896_v13  ;;  %v2261_v39 = vrot.slane %v2241_v28, %v903_v25  ;;  %v2270_v47 = vrot.slane %v2241_v28, %v1011_v31  ;;  %v2277_v48 = vrot.slane %v2241_v28, %v883_v32  ;;  %vm745_vm4 = vcmp.eq.s32.totalorder %v2223_v19, 0 }
  0x1e   : > { %s321_s23 = scalar_lea.vmem %s290_s21, %s1707_s11  ;;  %s3605_s16 = smov (!%p298_p0, %s297_s16), 15  ;;  %v1886_v3 = vld [vmem:[%s302_s22] sm:$0xff]   ;;  %v1887_v4 = vld [vmem:[%s302_s22 + $0x8] sm:$0xff]   ;;  %v1888_v5 = vld [vmem:[%s302_s22 + $0x10] sm:$0xff]   ;;  %1762 = vmatprep.subr.bf16.mxu0 %v1895_v12  ;;  %1796 = vmatprep.subr.bf16.mxu1 %v1897_v14  ;;  %v2289_v57 = vrot.slane %v2241_v28, %v939_v40  ;;  %v2292_v58 = vrot.slane %v2241_v28, %v1047_v41 }
  0x1f   : > { %v1885_v2 = vld [vmem:[%s321_s23] sm:$0xff]   ;;  %s1708_s9 = sshll.u32 %s3605_s16, 3  ;;  %v1889_v6 = vld [vmem:[%s302_s22 + $0x18] sm:$0xff]   ;;  %v1891_v8 = vld [vmem:[%s302_s22 + $0x28] sm:$0xff]   ;;  %p729_p1 = scmp.eq.s32.totalorder %s2051_s27, 0 }
  0x20   : > { %1742 = vmatprep.mubr.msk.bf16.mxu0 %vm402_vm0, %v1885_v2  ;;  %s326_s10 = scalar_lea.vmem %s290_s21, %s1708_s9  ;;  %v1890_v7 = vld [vmem:[%s302_s22 + $0x20] sm:$0xff]   ;;  %v1892_v9 = vld [vmem:[%s302_s22 + $0x30] sm:$0xff]   ;;  %v1893_v10 = vld [vmem:[%s302_s22 + $0x38] sm:$0xff]   ;;  %p733_p2 = scmp.eq.s32.totalorder %s2051_s27, 1 }
  0x21   : > { %1743 = vmatmul.mubr.msk.bf16.vlgmr.msra.gmra.mxu0 %vm402_vm0, %v1886_v3  ;;  %v1894_v11 = vld [vmem:[%s326_s10] sm:$0xff]   ;;  %1804 = vmatpush3.bf16.msra.mxu1 %v1897_v14  ;;  %s2274_s17 = scalar_select %p729_p1, 1, 0 }
  0x22   : > { %1746 = vmatprep.mubr.msk.bf16.mxu0 %vm402_vm0, %v1887_v4  ;;  %1763 = vmatpush3.bf16.msra.mxu0 %v1895_v12  ;;  %s2353_s23 = scalar_select %p733_p2, 1, 0 }
  0x23   : > { %1764 = vmatprep.subr.bf16.mxu0 %v1896_v13  ;;  %1797 = vmatprep.subr.bf16.mxu1 %v1898_v17  ;;  %v731_v1 = vstv %s2274_s17  ;;  %s283_s13 = sand.u32 1, %s2043_s25   ;;  %s1709_s21 = sshll.u32 %s2051_s27, 4 }
  0x24   : > { %vm2361_vm1 = vcmp.eq.s32.totalorder %v731_v1, 1  ;;  %s1652_s16 = sshll.u32 %s283_s13, 7  ;;  %s1700_s22 = sshll.u32 %s2055_s28, 5 }
  0x25   : > { %1805 = vmatpush3.bf16.msra.mxu1 %v1898_v17  ;;  %s3343_s20 = scalar_lea.vmem [#allocation2], %s1652_s16  ;;  %s3389_s12 = scalar_lea.sflag [#allocation3], %s283_s13 }
  0x26   : > { %1765 = vmatpush3.bf16.msra.mxu0 %v1896_v13  ;;  %1798 = vmatprep.subr.bf16.mxu1 %v1899_v22  ;;  %s1565_s10 = sshll.u32 %s3343_s20, 4  ;;  %s2069_s17 = smov [#allocation2]   ;;  %s3381_s10 = int_to_ptr.vmem [resolvable:$true] %s1565_s10 }
  0x27   : > { %1766 = vmatprep.subr.bf16.mxu0 %v1897_v14  ;;  %s1975_s16 = scalar_lea.vmem %s3381_s10, 2048  ;;  %s1979_s18 = sshll.u32 %s2069_s17, 4  ;;  %s1980_s18 = int_to_ptr.vmem [resolvable:$false] %s1979_s18 }
  0x28   : > { %p1976_p4 = scmp.ne.s32.totalorder %s3381_s10, %s1975_s16  ;;  %p1982_p7 = scmp.lt.s32.totalorder %s3381_s10, %s1980_s18 }
  0x29   : > { %1747 = vmatmul.mubr.msk.bf16.gmra.mxu0 %vm402_vm0, %v1888_v5  ;;  %1806 = vmatpush3.bf16.msra.mxu1 %v1899_v22 }
  0x2a   : > { %1750 = vmatprep.mubr.msk.bf16.mxu0 %vm402_vm0, %v1889_v6  ;;  %1767 = vmatpush3.bf16.msra.mxu0 %v1897_v14  ;;  %v1902_v6 = vld [vmem:[%s3445_s5] sm:$0xff]   ;;  %p1977_p5 = pnand %p1976_p4, %p2163_p3 }
  0x2b   : > { %1768 = vmatprep.subr.bf16.mxu0 %v1898_v17  ;;  %1799 = vmatprep.subr.bf16.mxu1 %v1900_v34 }
  0x2c   : > { %p1978_p6 = pneg %p1977_p5 }
  0x2d   : > { %1807 = vmatpush3.bf16.msra.mxu1 %v1900_v34 }
  0x2e   : > { %1769 = vmatpush3.bf16.msra.mxu0 %v1898_v17  ;;  %1800 = vmatprep.subr.bf16.mxu1 %v1901_v52 }
  0x2f   : > { %1770 = vmatprep.subr.bf16.mxu0 %v1899_v22 }
  0x31   : > { %1751 = vmatmul.mubr.msk.bf16.gmra.mxu0 %vm402_vm0, %v1890_v7  ;;  %1808 = vmatpush3.bf16.msra.mxu1 %v1901_v52 }
  0x32   : > { %1754 = vmatprep.mubr.msk.bf16.mxu0 %vm402_vm0, %v1891_v8  ;;  %1771 = vmatpush3.bf16.msra.mxu0 %v1899_v22 }
  0x33   : > { %1772 = vmatprep.subr.bf16.mxu0 %v1900_v34  ;;  %1801 = vmatprep.subr.bf16.mxu1 %v1902_v6 }
  0x35   : > { %1809 = vmatpush3.bf16.msra.mxu1 %v1902_v6 }
  0x36   : > { %1773 = vmatpush3.bf16.msra.mxu0 %v1900_v34 }
  0x37   : > { %1774 = vmatprep.subr.bf16.mxu0 %v1901_v52 }
  0x39   : > { %1755 = vmatmul.mubr.msk.bf16.gmra.mxu0 %vm402_vm0, %v1892_v9 }
  0x3a   : > { %1758 = vmatprep.mubr.msk.bf16.mxu0 %vm402_vm0, %v1893_v10  ;;  %v2315_v10 = vrot.slane %v2241_v28, %v975_v49  ;;  %1775 = vmatpush3.bf16.msra.mxu0 %v1901_v52 }
  0x3b   : > { %1776 = vmatprep.subr.bf16.mxu0 %v1902_v6 }
  0x3e   : > { %1777 = vmatpush3.bf16.msra.mxu0 %v1902_v6 }
  0x41   : > { %1759 = vmatmul.mubr.msk.bf16.gmra.mxu0 %vm402_vm0, %v1894_v11 }
  0xe1   : > { %v1744_v18 = vpop.f32.mrf.mxu0 }
  0xe2   : > { %v2226_v20 = vadd.f32 %v1744_v18, %v2218_v16 }
  0xe3   : > { %v467_v21 = vpop.f32.mrf.mxu0 }
  0xe4   : > { %v548_v23 = vmul.f32 %v2226_v20, %v2226_v20  ;;  %v2234_v24 = vadd.f32 %v2218_v16, %v467_v21  ;;  %v2326_v21 = vadd.s32 8, %v2223_v19 }
  0xe5   : > { %v1745_v26 = vpop.f32.mrf.mxu0 }
  0xe6   : > { %v568_v27 = vmul.f32 %v548_v23, %v2226_v20  ;;  %v546_v29 = vmul.f32 %v2234_v24, %v2234_v24  ;;  %v2246_v30 = vadd.f32 %v1745_v26, %v2218_v16  ;;  %vm813_vm5 = vcmp.eq.s32.totalorder %v2326_v21, 15 }
  0xe7   : > { %v470_v33 = vpop.f32.mrf.mxu0 }
  0xe8   : > { %v588_v35 = vmul.f32 0.044715, %v568_v27  ;;  %v566_v36 = vmul.f32 %v546_v29, %v2234_v24  ;;  %v549_v37 = vmul.f32 %v2246_v30, %v2246_v30  ;;  %v2258_v38 = vadd.f32 %v2218_v16, %v470_v33 }
  0xe9   : > { %v1748_v42 = vpop.f32.mrf.mxu0  ;;  %v1119_v33 = vsub.s32 7, %v2223_v19 }
  0xea   : > { %v608_v43 = vadd.f32 %v588_v35, %v2226_v20  ;;  %v586_v44 = vmul.f32 0.044715, %v566_v36  ;;  %v569_v45 = vmul.f32 %v549_v37, %v2246_v30  ;;  %v547_v46 = vmul.f32 %v2258_v38, %v2258_v38 }
  0xeb   : > { %v2281_v50 = vadd.f32 %v1748_v42, %v2218_v16  ;;  %v483_v51 = vpop.f32.mrf.mxu0 }
  0xec   : > { %v628_v53 = vmul.f32 0.7978846, %v608_v43  ;;  %v606_v54 = vadd.f32 %v586_v44, %v2234_v24  ;;  %v589_v55 = vmul.f32 0.044715, %v569_v45  ;;  %v567_v56 = vmul.f32 %v547_v46, %v2258_v38 }
  0xed   : > { %v552_v59 = vmul.f32 %v2281_v50, %v2281_v50  ;;  %v2297_v60 = vadd.f32 %v2218_v16, %v483_v51  ;;  %v1749_v61 = vpop.f32.mrf.mxu0  ;;  %v1083_v45 = vsub.s32 6, %v2223_v19 }
  0xee   : > { %1903 = vtanh.f32 %v628_v53  ;;  %v626_v62 = vmul.f32 0.7978846, %v606_v54  ;;  %v609_v63 = vadd.f32 %v589_v55, %v2246_v30  ;;  %v587_v0 = vmul.f32 0.044715, %v567_v56 }
  0xef   : > { %v572_v2 = vmul.f32 %v552_v59, %v2281_v50  ;;  %v550_v3 = vmul.f32 %v2297_v60, %v2297_v60  ;;  %v2305_v4 = vadd.f32 %v1749_v61, %v2218_v16  ;;  %v486_v5 = vpop.f32.mrf.mxu0  ;;  %v2356_v54 = vrot.slane %v2241_v28, %v1119_v33 }
  0xf0   : > { %1905 = vtanh.f32 %v626_v62  ;;  %v629_v7 = vmul.f32 0.7978846, %v609_v63  ;;  %v607_v8 = vadd.f32 %v587_v0, %v2258_v38  ;;  %v2312_v9 = vadd.f32 %v2218_v16, %v486_v5 }
  0xf1   : > { %v592_v11 = vmul.f32 0.044715, %v572_v2  ;;  %v570_v12 = vmul.f32 %v550_v3, %v2297_v60  ;;  %v553_v13 = vmul.f32 %v2305_v4, %v2305_v4  ;;  %v1752_v14 = vpop.f32.mrf.mxu0  ;;  %v2368_v5 = vrot.slane %v2241_v28, %v1083_v45 }
  0xf2   : > { %1907 = vtanh.f32 %v629_v7  ;;  %v627_v15 = vmul.f32 0.7978846, %v607_v8  ;;  %v551_v17 = vmul.f32 %v2312_v9, %v2312_v9  ;;  %v2323_v18 = vadd.f32 %v1752_v14, %v2218_v16 }
  0xf3   : > { %v612_v22 = vadd.f32 %v592_v11, %v2281_v50  ;;  %v590_v23 = vmul.f32 0.044715, %v570_v12  ;;  %v573_v25 = vmul.f32 %v553_v13, %v2305_v4  ;;  %v499_v26 = vpop.f32.mrf.mxu0 }
  0xf4   : > { %1909 = vtanh.f32 %v627_v15  ;;  %v571_v27 = vmul.f32 %v551_v17, %v2312_v9  ;;  %v556_v29 = vmul.f32 %v2323_v18, %v2323_v18  ;;  %v2334_v31 = vadd.f32 %v2218_v16, %v499_v26 }
  0xf5   : > { %v632_v32 = vmul.f32 0.7978846, %v612_v22  ;;  %v610_v34 = vadd.f32 %v590_v23, %v2297_v60  ;;  %v593_v35 = vmul.f32 0.044715, %v573_v25  ;;  %v1753_v36 = vpop.f32.mrf.mxu0 }
  0xf6   : > { %v591_v37 = vmul.f32 0.044715, %v571_v27  ;;  %v576_v40 = vmul.f32 %v556_v29, %v2323_v18  ;;  %v554_v41 = vmul.f32 %v2334_v31, %v2334_v31  ;;  %v2343_v42 = vadd.f32 %v1753_v36, %v2218_v16 }
  0xf7   : > { %1911 = vtanh.f32 %v632_v32  ;;  %v630_v43 = vmul.f32 0.7978846, %v610_v34  ;;  %v613_v44 = vadd.f32 %v593_v35, %v2305_v4  ;;  %v502_v46 = vpop.f32.mrf.mxu0 }
  0xf8   : > { %v611_v49 = vadd.f32 %v591_v37, %v2312_v9  ;;  %v596_v51 = vmul.f32 0.044715, %v576_v40  ;;  %v574_v52 = vmul.f32 %v554_v41, %v2334_v31  ;;  %v557_v53 = vmul.f32 %v2343_v42, %v2343_v42 }
  0xf9   : > { %1913 = vtanh.f32 %v630_v43  ;;  %v633_v55 = vmul.f32 0.7978846, %v613_v44  ;;  %v2359_v56 = vadd.f32 %v2218_v16, %v502_v46  ;;  %v1756_v59 = vpop.f32.mrf.mxu0 }
  0xfa   : > { %v631_v62 = vmul.f32 0.7978846, %v611_v49  ;;  %v616_v63 = vadd.f32 %v596_v51, %v2323_v18  ;;  %v594_v0 = vmul.f32 0.044715, %v574_v52  ;;  %v577_v2 = vmul.f32 %v557_v53, %v2343_v42 }
  0xfb   : > { %v1904_v3 = vpop.eup %1903  ;;  %1915 = vtanh.f32 %v633_v55  ;;  %v555_v6 = vmul.f32 %v2359_v56, %v2359_v56  ;;  %v2373_v7 = vadd.f32 %v1756_v59, %v2218_v16  ;;  %v515_v1 = vpop.f32.mrf.mxu0 }
  0xfc   : > { %v668_v8 = vadd.f32 1.0, %v1904_v3  ;;  %v636_v11 = vmul.f32 0.7978846, %v616_v63  ;;  %v614_v12 = vadd.f32 %v594_v0, %v2334_v31  ;;  %v597_v15 = vmul.f32 0.044715, %v577_v2 }
  0xfd   : > { %v1906_v14 = vpop.eup %1905  ;;  %v575_v17 = vmul.f32 %v555_v6, %v2359_v56  ;;  %v560_v28 = vmul.f32 %v2373_v7, %v2373_v7  ;;  %v2381_v22 = vadd.f32 %v2218_v16, %v515_v1  ;;  %1917 = vtanh.f32 %v631_v62  ;;  %v1757_v59 = vpop.f32.mrf.mxu0 }
  0xfe   : > { %v688_v23 = vmul.f32 0.5, %v668_v8  ;;  %v666_v25 = vadd.f32 1.0, %v1906_v14  ;;  %v634_v26 = vmul.f32 0.7978846, %v614_v12  ;;  %v617_v29 = vadd.f32 %v597_v15, %v2343_v42 }
  0xff   : > { %v1908_v27 = vpop.eup %1907  ;;  %v595_v32 = vmul.f32 0.044715, %v575_v17  ;;  %v580_v33 = vmul.f32 %v560_v28, %v2373_v7  ;;  %v558_v34 = vmul.f32 %v2381_v22, %v2381_v22  ;;  %1919 = vtanh.f32 %v636_v11 }
 0x100   : > { %v2390_v35 = vmul.f32 %v688_v23, %v2226_v20  ;;  %v686_v36 = vmul.f32 0.5, %v666_v25  ;;  %v669_v37 = vadd.f32 1.0, %v1908_v27  ;;  %v637_v41 = vmul.f32 0.7978846, %v617_v29 }
 0x101   : > { %v1910_v40 = vpop.eup %1909  ;;  %v615_v43 = vadd.f32 %v595_v32, %v2359_v56  ;;  %v600_v44 = vmul.f32 0.044715, %v580_v33  ;;  %v578_v45 = vmul.f32 %v558_v34, %v2381_v22  ;;  %1921 = vtanh.f32 %v634_v26 }
 0x102   : > { %v749_v46 = vrot.slane %v2390_v35, 7  ;;  %v816_v49 = vrot.slane %v2390_v35, 1  ;;  %v2398_v51 = vmul.f32 %v2261_v39, %v2390_v35  ;;  %v2402_v20 = vmul.f32 %v2270_v47, %v2390_v35 }
 0x103   : > { %v706_v52 = vmul.f32 %v686_v36, %v2234_v24  ;;  %v689_v53 = vmul.f32 0.5, %v669_v37  ;;  %v667_v55 = vadd.f32 1.0, %v1910_v40  ;;  %1923 = vtanh.f32 %v637_v41 }
 0x104   : > { %3483 = vst [vmem:[#allocation7_spill] sm:$0xff] %v2402_v20  ;;  %v1912_v62 = vpop.eup %1911  ;;  %v635_v63 = vmul.f32 0.7978846, %v615_v43  ;;  %v620_v0 = vadd.f32 %v600_v44, %v2373_v7  ;;  %v598_v2 = vmul.f32 0.044715, %v578_v45  ;;  %v2422_v15 = vadd.f32 %v1757_v59, %v2218_v16 }
 0x105   : > { %v2410_v3 = vsel %vm2361_vm1, 0.0, %v706_v52  ;;  %v2413_v6 = vmul.f32 %v689_v53, %v2246_v30  ;;  %v687_v24 = vmul.f32 0.5, %v667_v55  ;;  %v672_v1 = vadd.f32 1.0, %v1912_v62 }
 0x106   : > { %v1914_v8 = vpop.eup %1913  ;;  %v3451_v11 = vrot.slane %v2410_v3, 7  ;;  %v3450_v12 = vrot.slane %v2410_v3, 1  ;;  %v2419_v14 = vmul.f32 %v2261_v39, %v2410_v3  ;;  %1925 = vtanh.f32 %v635_v63 }
 0x107   : > { %v750_v17 = vrot.slane %v2413_v6, 7  ;;  %v817_v28 = vrot.slane %v2413_v6, 1  ;;  %v908_v30 = vmul.f32 %v2261_v39, %v2413_v6  ;;  %v1014_v25 = vmul.f32 %v2270_v47, %v2413_v6 }
 0x108   : > { %v1916_v23 = vpop.eup %1915  ;;  %v707_v26 = vmul.f32 %v687_v24, %v2258_v38  ;;  %v692_v27 = vmul.f32 0.5, %v672_v1  ;;  %v670_v29 = vadd.f32 1.0, %v1914_v8  ;;  %v2439_v35 = vmul.f32 0.7978846, %v620_v0 }
 0x109   : > { %v784_v32 = vsel %vm767_vm2, %v749_v46, %v750_v17  ;;  %v851_v33 = vsel %vm834_vm3, %v816_v49, %v817_v28  ;;  %v673_v34 = vadd.f32 1.0, %v1916_v23  ;;  %v2446_v40 = vadd.f32 %v598_v2, %v2381_v22 }
 0x10a   : > { %v888_v36 = vmul.f32 %v2277_v48, %v784_v32  ;;  %v943_v37 = vmul.f32 %v2289_v57, %v851_v33  ;;  %v742_v38 = vsel %vm2361_vm1, 0.0, %v707_v26  ;;  %v1918_v41 = vpop.eup %1917  ;;  %v2449_v43 = vmul.f32 %v2292_v58, %v851_v33 }
 0x10b   : > { %v748_v44 = vrot.slane %v742_v38, 7  ;;  %v815_v45 = vrot.slane %v742_v38, 1  ;;  %v906_v52 = vmul.f32 %v2261_v39, %v742_v38  ;;  %v978_v53 = vmul.f32 %v2315_v10, %v784_v32 }
 0x10c   : > { %3484 = vst [vmem:[#allocation8_spill] sm:$0xff] %v2449_v43  ;;  %v2454_v55 = vmul.f32 %v692_v27, %v2281_v50  ;;  %v690_v59 = vmul.f32 0.5, %v670_v29  ;;  %v693_v62 = vmul.f32 0.5, %v673_v34  ;;  %v1920_v61 = vpop.eup %1919  ;;  %v924_v24 = vadd.f32 %v908_v30, %v888_v36 }
 0x10d   : > { %v785_v63 = vsel %vm767_vm2, %v748_v44, %v749_v46  ;;  %v786_v0 = vsel %vm767_vm2, %v3451_v11, %v748_v44  ;;  %v852_v2 = vsel %vm834_vm3, %v815_v45, %v816_v49  ;;  %v853_v50 = vsel %vm834_vm3, %v3450_v12, %v815_v45 }
 0x10e   : > { %v794_v1 = vsel %vm745_vm4, 0.0, %v785_v63  ;;  %v860_v46 = vsel %vm813_vm5, 0.0, %v852_v2  ;;  %v886_v8 = vmul.f32 %v2277_v48, %v786_v0  ;;  %v1922_v23 = vpop.eup %1921  ;;  %v2475_v27 = vmul.f32 %v2289_v57, %v853_v50 }
 0x10f   : > { %v887_v26 = vmul.f32 %v2277_v48, %v794_v1  ;;  %v942_v49 = vmul.f32 %v2289_v57, %v860_v46  ;;  %v2479_v29 = vmul.f32 %v2315_v10, %v794_v1  ;;  %v3453_v32 = vrot.slane %v2454_v55, 7 }
 0x110   : > { %3485 = vst [vmem:[#allocation9_spill] sm:$0xff] %v2475_v27  ;;  %v922_v30 = vadd.f32 %v906_v52, %v886_v8  ;;  %v2485_v34 = vmul.f32 %v2261_v39, %v2454_v55  ;;  %v1924_v36 = vpop.eup %1923  ;;  %v2490_v44 = vmul.f32 %v2270_v47, %v2454_v55  ;;  %v2493_v45 = vmul.f32 %v690_v59, %v2297_v60 }
 0x111   : > { %3486 = vst [vmem:[#allocation10_spill] sm:$0xff] %v2479_v29  ;;  %v923_v38 = vadd.f32 %v2398_v51, %v887_v26  ;;  %v2496_v52 = vmul.f32 %v693_v62, %v2305_v4  ;;  %v2500_v0 = vmul.f32 %v2356_v54, %v2454_v55  ;;  %v671_v2 = vadd.f32 1.0, %v1918_v41 }
 0x112   : > { %3487 = vst [vmem:[#allocation11_spill] sm:$0xff] %v2493_v45  ;;  %v958_v63 = vadd.f32 %v942_v49, %v922_v30  ;;  %v676_v50 = vadd.f32 1.0, %v1920_v61  ;;  %v751_v51 = vrot.slane %v2493_v45, 7  ;;  %v818_v46 = vrot.slane %v2493_v45, 1  ;;  %v518_v30 = vpop.f32.mrf.mxu0 }
 0x113   : > { %3488 = vst [vmem:[#allocation12_spill] sm:$0xff] %v2500_v0  ;;  %v959_v1 = vadd.f32 %v943_v37, %v923_v38  ;;  %v674_v8 = vadd.f32 1.0, %v1922_v23  ;;  %v1926_v26 = vpop.eup %1925  ;;  %v909_v60 = vmul.f32 %v2261_v39, %v2493_v45  ;;  %v1015_v4 = vmul.f32 %v2270_v47, %v2493_v45 }
 0x114   : > { %v994_v12 = vadd.f32 %v978_v53, %v958_v63  ;;  %v3452_v59 = vrot.slane %v2496_v52, 7  ;;  %v783_v37 = vsel %vm767_vm2, %v750_v17, %v751_v51  ;;  %v850_v41 = vsel %vm834_vm3, %v817_v28, %v818_v46 }
 0x115   : > { %v912_v62 = vmul.f32 %v2261_v39, %v2496_v52  ;;  %v2524_v23 = vsel %vm745_vm4, 0.0, %v783_v37  ;;  %v2528_v49 = vsel %vm813_vm5, 0.0, %v850_v41  ;;  %v2548_v38 = vmul.f32 %v2270_v47, %v2496_v52 }
 0x116   : > { %v2520_v61 = vadd.f32 %v1014_v25, %v994_v12  ;;  %3490 = vst [vmem:[#allocation14_spill] sm:$0xff] %v2524_v23  ;;  %3491 = vst [vmem:[#allocation15_spill] sm:$0xff] %v2528_v49  ;;  %v2536_v6 = vsel %vm767_vm2, %v3453_v32, %v3452_v59  ;;  %v889_v12 = vmul.f32 %v2277_v48, %v2524_v23  ;;  %v691_v37 = vmul.f32 0.5, %v671_v2 }
 0x117   : > { %v944_v17 = vmul.f32 %v2289_v57, %v2528_v49  ;;  %v979_v28 = vmul.f32 %v2315_v10, %v2524_v23  ;;  %v892_v25 = vmul.f32 %v2277_v48, %v2536_v6  ;;  %v2552_v63 = vmul.f32 %v2368_v5, %v2536_v6 }
 0x118   : > { %3489 = vst [vmem:[#allocation13_spill] sm:$0xff] %v2520_v61  ;;  %v696_v41 = vmul.f32 0.5, %v676_v50  ;;  %v2554_v11 = vadd.f32 %v909_v60, %v889_v12  ;;  %v2560_v59 = vmul.f32 %v2356_v54, %v2496_v52  ;;  %v2563_v32 = vmul.f32 %v691_v37, %v2312_v9 }
 0x119   : > { %v995_v13 = vadd.f32 %v979_v28, %v959_v1  ;;  %v2556_v53 = vadd.f32 %v912_v62, %v892_v25  ;;  %v960_v33 = vadd.f32 %v944_v17, %v924_v24  ;;  %v694_v45 = vmul.f32 0.5, %v674_v8  ;;  %v1760_v1 = vpop.f32.mrf.mxu0 }
 0x11a   : > { %3492 = vst [vmem:[#allocation16_spill] sm:$0xff] %v2560_v59  ;;  %3493 = vst [vmem:[#allocation17_spill] sm:$0xff] %v2563_v32  ;;  %v2566_v0 = vmul.f32 %v696_v41, %v2323_v18  ;;  %v677_v2 = vadd.f32 1.0, %v1924_v36  ;;  %v675_v50 = vadd.f32 1.0, %v1926_v26  ;;  %1927 = vtanh.f32 %v2439_v35 }
 0x11b   : > { %v1031_v61 = vadd.f32 %v1015_v4, %v995_v13  ;;  %v752_v60 = vrot.slane %v2563_v32, 7  ;;  %v819_v62 = vrot.slane %v2563_v32, 1  ;;  %v910_v12 = vmul.f32 %v2261_v39, %v2563_v32  ;;  %v531_v37 = vpop.f32.mrf.mxu0 }
 0x11c   : > { %3494 = vst [vmem:[#allocation18_spill] sm:$0xff] %v2566_v0  ;;  %v638_v9 = vmul.f32 0.7978846, %v2446_v40  ;;  %v1016_v18 = vmul.f32 %v2270_v47, %v2563_v32  ;;  %v757_v24 = vrot.slane %v2566_v0, 7  ;;  %v2580_v35 = vmul.f32 %v2261_v39, %v2566_v0 }
 0x11d   : > { %v2584_v36 = vsel %vm767_vm2, %v751_v51, %v752_v60  ;;  %v3497_v8 = vrot.slane %v2454_v55, 1  ;;  %v2592_v26 = vsel %vm834_vm3, %v818_v46, %v819_v62  ;;  %v2596_v4 = vmul.f32 %v2270_v47, %v2566_v0 }
 0x11e   : > { %3495 = vst [vmem:[#allocation19_spill] sm:$0xff] %v2580_v35  ;;  %3496 = vst [vmem:[#allocation20_spill] sm:$0xff] %v2584_v36  ;;  %v3500_v17 = vrot.slane %v2454_v55, 7  ;;  %v890_v25 = vmul.f32 %v2277_v48, %v2584_v36  ;;  %v980_v46 = vmul.f32 %v2315_v10, %v2584_v36  ;;  %v1051_v41 = vmul.f32 %v2292_v58, %v2592_v26 }
 0x11f   : > { %v848_v40 = vsel %vm834_vm3, %v819_v62, %v3497_v8  ;;  %3498 = vst [vmem:[#allocation21_spill] sm:$0xff] %v2592_v26  ;;  %3499 = vst [vmem:[#allocation22_spill] sm:$0xff] %v2596_v4  ;;  %v2615_v62 = vmul.f32 %v694_v45, %v2334_v31  ;;  %v697_v8 = vmul.f32 0.5, %v677_v2  ;;  %1929 = vtanh.f32 %v638_v9 }
 0x120   : > { %v2602_v28 = vsel %vm767_vm2, %v752_v60, %v3500_v17  ;;  %v2606_v51 = vsel %vm813_vm5, 0.0, %v848_v40  ;;  %v695_v60 = vmul.f32 0.5, %v675_v50  ;;  %v2617_v17 = vadd.f32 %v910_v12, %v890_v25 }
 0x121   : > { %3501 = vst [vmem:[#allocation23_spill] sm:$0xff] %v2606_v51  ;;  %v996_v13 = vadd.f32 %v980_v46, %v960_v33  ;;  %v1052_v40 = vmul.f32 %v2292_v58, %v2606_v51  ;;  %v2621_v59 = vadd.f32 %v1051_v41, %v1031_v61  ;;  %v755_v32 = vrot.slane %v2615_v62, 7  ;;  %v1761_v61 = vpop.f32.mrf.mxu0 }
 0x122   : > { %v2626_v43 = vmul.f32 %v2261_v39, %v2615_v62  ;;  %v2629_v31 = vmul.f32 %v697_v8, %v2343_v42  ;;  %v2632_v2 = vmul.f32 %v695_v60, %v2359_v56  ;;  %v561_v33 = vmul.f32 %v2422_v15, %v2422_v15 }
 0x123   : > { %3502 = vst [vmem:[#allocation24_spill] sm:$0xff] %v2621_v59  ;;  %v1032_v45 = vadd.f32 %v1016_v18, %v996_v13  ;;  %v2637_v50 = vadd.f32 %v2218_v16, %v518_v30  ;;  %v2641_v12 = vmul.f32 %v2270_v47, %v2615_v62  ;;  %v2666_v60 = vadd.f32 %v1760_v1, %v2218_v16 }
 0x124   : > { %3503 = vst [vmem:[#allocation25_spill] sm:$0xff] %v2629_v31  ;;  %3504 = vst [vmem:[#allocation26_spill] sm:$0xff] %v2632_v2  ;;  %v3456_v9 = vrot.slane %v2629_v31, 7  ;;  %v916_v18 = vmul.f32 %v2261_v39, %v2629_v31  ;;  %v2649_v13 = vmul.f32 %v2270_v47, %v2629_v31  ;;  %v756_v30 = vrot.slane %v2632_v2, 7 }
 0x125   : > { %v1068_v56 = vadd.f32 %v1052_v40, %v1032_v45  ;;  %v2654_v25 = vmul.f32 %v2261_v39, %v2632_v2  ;;  %v581_v41 = vmul.f32 %v561_v33, %v2422_v15  ;;  %v559_v8 = vmul.f32 %v2637_v50, %v2637_v50  ;;  %v534_v33 = vpop.f32.mrf.mxu0 }
 0x126   : > { %3505 = vst [vmem:[#allocation27_spill] sm:$0xff] %v2649_v13  ;;  %v2660_v46 = vsel %vm767_vm2, %v757_v24, %v3456_v9  ;;  %v777_v45 = vsel %vm767_vm2, %v756_v30, %v757_v24  ;;  %v2674_v42 = vmul.f32 %v2270_v47, %v2632_v2  ;;  %v2677_v9 = vadd.f32 %v2218_v16, %v531_v37 }
 0x127   : > { %3506 = vst [vmem:[#allocation28_spill] sm:$0xff] %v2660_v46  ;;  %v896_v40 = vmul.f32 %v2277_v48, %v2660_v46  ;;  %v1928_v59 = vpop.eup %1927  ;;  %v2680_v36 = vadd.f32 %v2552_v63, %v1068_v56  ;;  %v601_v1 = vmul.f32 0.044715, %v581_v41  ;;  %v579_v23 = vmul.f32 %v559_v8, %v2637_v50 }
 0x128   : > { %v564_v49 = vmul.f32 %v2666_v60, %v2666_v60  ;;  %v2687_v24 = vsel %vm745_vm4, 0.0, %v777_v45  ;;  %v680_v20 = vadd.f32 1.0, %v1928_v59  ;;  %v562_v37 = vmul.f32 %v2677_v9, %v2677_v9 }
 0x129   : > { %3507 = vst [vmem:[#allocation29_spill] sm:$0xff] %v2680_v36  ;;  %3508 = vst [vmem:[#allocation30_spill] sm:$0xff] %v2687_v24  ;;  %v2692_v13 = vadd.f32 %v1761_v61, %v2218_v16  ;;  %v621_v63 = vadd.f32 %v601_v1, %v2422_v15  ;;  %v599_v56 = vmul.f32 0.044715, %v579_v23  ;;  %v2697_v8 = vadd.f32 %v2218_v16, %v534_v33 }
 0x12a   : > { %v584_v41 = vmul.f32 %v564_v49, %v2666_v60  ;;  %v2699_v36 = vadd.f32 %v916_v18, %v896_v40  ;;  %v700_v4 = vmul.f32 0.5, %v680_v20  ;;  %v582_v45 = vmul.f32 %v562_v37, %v2677_v9 }
 0x12b   : > { %v565_v59 = vmul.f32 %v2692_v13, %v2692_v13  ;;  %v641_v35 = vmul.f32 0.7978846, %v621_v63  ;;  %v619_v61 = vadd.f32 %v599_v56, %v2637_v50  ;;  %v563_v23 = vmul.f32 %v2697_v8, %v2697_v8 }
 0x12c   : > { %3509 = vst [vmem:[#allocation31_spill] sm:$0xff] %v2699_v36  ;;  %v604_v29 = vmul.f32 0.044715, %v584_v41  ;;  %v2708_v49 = vmul.f32 %v700_v4, %v2373_v7  ;;  %v602_v16 = vmul.f32 0.044715, %v582_v45  ;;  %v2713_v20 = vsel %vm767_vm2, %v755_v32, %v756_v30  ;;  %v1930_v40 = vpop.eup %1929 }
 0x12d   : > { %v585_v18 = vmul.f32 %v565_v59, %v2692_v13  ;;  %1931 = vtanh.f32 %v641_v35  ;;  %v639_v33 = vmul.f32 0.7978846, %v619_v61  ;;  %v583_v37 = vmul.f32 %v563_v23, %v2697_v8 }
 0x12e   : > { %v624_v1 = vadd.f32 %v604_v29, %v2666_v60  ;;  %v2721_v7 = vmul.f32 %v2261_v39, %v2708_v49  ;;  %v3510_v4 = vrot.slane %v2496_v52, 7  ;;  %v678_v41 = vadd.f32 1.0, %v1930_v40 }
 0x12f   : > { %1933 = vtanh.f32 %v639_v33  ;;  %v622_v29 = vadd.f32 %v602_v16, %v2677_v9  ;;  %v2730_v45 = vmul.f32 %v2270_v47, %v2708_v49  ;;  %v605_v59 = vmul.f32 0.044715, %v585_v18 }
 0x130   : > { %v779_v30 = vsel %vm767_vm2, %v3510_v4, %v755_v32  ;;  %v644_v35 = vmul.f32 0.7978846, %v624_v1  ;;  %v603_v61 = vmul.f32 0.044715, %v583_v37  ;;  %v2735_v23 = vsel %vm745_vm4, 0.0, %v2602_v28 }
 0x131   : > { %3511 = vst [vmem:[#allocation32_spill] sm:$0xff] %v2730_v45  ;;  %v698_v56 = vmul.f32 0.5, %v678_v41  ;;  %v642_v63 = vmul.f32 0.7978846, %v622_v29  ;;  %v822_v32 = vrot.slane %v2615_v62, 1  ;;  %v625_v40 = vadd.f32 %v605_v59, %v2692_v13 }
 0x132   : > { %1935 = vtanh.f32 %v644_v35  ;;  %v623_v16 = vadd.f32 %v603_v61, %v2697_v8  ;;  %v2742_v33 = vsel %vm745_vm4, 0.0, %v779_v30  ;;  %v823_v18 = vrot.slane %v2632_v2, 1 }
 0x133   : > { %v2746_v1 = vmul.f32 %v698_v56, %v2381_v22  ;;  %1937 = vtanh.f32 %v642_v63  ;;  %v3512_v28 = vrot.slane %v2496_v52, 1  ;;  %v891_v4 = vmul.f32 %v2277_v48, %v2735_v23 }
 0x134   : > { %v645_v41 = vmul.f32 0.7978846, %v625_v40  ;;  %v643_v35 = vmul.f32 0.7978846, %v623_v16  ;;  %v3513_v29 = vrot.slane %v2566_v0, 1  ;;  %v3515_v22 = vrot.slane %v2454_v55, 1 }
 0x135   : > { %v846_v37 = vsel %vm834_vm3, %v3512_v28, %v822_v32  ;;  %v3514_v59 = vmov %v3512_v28  ;;  %v3460_v56 = vrot.slane %v2746_v1, 7  ;;  %v917_v40 = vmul.f32 %v2261_v39, %v2746_v1 }
 0x136   : > { %v844_v30 = vsel %vm834_vm3, %v823_v18, %v3513_v29  ;;  %v2764_v63 = vsel %vm834_vm3, %v3515_v22, %v3514_v59  ;;  %v2772_v16 = vsel %vm834_vm3, %v822_v32, %v823_v18  ;;  %v2776_v52 = vmul.f32 %v2270_v47, %v2746_v1 }
 0x137   : > { %1939 = vtanh.f32 %v645_v41  ;;  %v2780_v55 = vsel %vm813_vm5, 0.0, %v846_v37  ;;  %v893_v28 = vmul.f32 %v2277_v48, %v2742_v33  ;;  %v3518_v29 = vrot.slane %v2629_v31, 7 }
 0x138   : > { %3516 = vst [vmem:[#allocation33_spill] sm:$0xff] %v2776_v52  ;;  %3517 = vst [vmem:[#allocation34_spill] sm:$0xff] %v2780_v55  ;;  %v2792_v18 = vsel %vm813_vm5, 0.0, %v844_v30  ;;  %v894_v41 = vmul.f32 %v2277_v48, %v2713_v20  ;;  %v927_v37 = vadd.f32 %v2485_v34, %v891_v4  ;;  %v945_v61 = vmul.f32 %v2289_v57, %v2592_v26 }
 0x139   : > { %v775_v32 = vsel %vm767_vm2, %v3518_v29, %v3460_v56  ;;  %v929_v22 = vadd.f32 %v2626_v43, %v893_v28  ;;  %v946_v29 = vmul.f32 %v2289_v57, %v2606_v51  ;;  %1941 = vtanh.f32 %v643_v35 }
 0x13a   : > { %v2799_v59 = vsel %vm745_vm4, 0.0, %v775_v32  ;;  %v930_v30 = vadd.f32 %v2654_v25, %v894_v41  ;;  %v947_v56 = vmul.f32 %v2289_v57, %v2764_v63  ;;  %v948_v34 = vmul.f32 %v2289_v57, %v2780_v55  ;;  %v1932_v4 = vpop.eup %1931 }
 0x13b   : > { %3519 = vst [vmem:[#allocation35_spill] sm:$0xff] %v2799_v59  ;;  %v949_v43 = vmul.f32 %v2289_v57, %v2772_v16  ;;  %v950_v28 = vmul.f32 %v2289_v57, %v2792_v18  ;;  %v961_v32 = vadd.f32 %v945_v61, %v2554_v11  ;;  %v962_v51 = vadd.f32 %v946_v29, %v2617_v17 }
 0x13c   : > { %v897_v25 = vmul.f32 %v2277_v48, %v2799_v59  ;;  %v681_v35 = vadd.f32 1.0, %v1932_v4  ;;  %v963_v41 = vadd.f32 %v947_v56, %v927_v37  ;;  %v964_v26 = vadd.f32 %v948_v34, %v2556_v53  ;;  %v1934_v45 = vpop.eup %1933 }
 0x13d   : > { %v3520_v52 = vstv %s2353_s23  ;;  %v965_v0 = vadd.f32 %v949_v43, %v929_v22  ;;  %v966_v31 = vadd.f32 %v950_v28, %v930_v30  ;;  %v981_v11 = vmul.f32 %v2315_v10, %v2735_v23  ;;  %s1562_s23 = sadd.s32 %s1709_s21, %s1700_s22  ;;  %s1981_s21 = scalar_lea.vmem %s1980_s18, 4096 }
 0x13e   : > { %vm2822_vm6 = vcmp.eq.s32.totalorder %v3520_v52, 1  ;;  %v982_v17 = vmul.f32 %v2315_v10, %v2536_v6  ;;  %v701_v61 = vmul.f32 0.5, %v681_v35  ;;  %v679_v29 = vadd.f32 1.0, %v1934_v45  ;;  %s1701_s9 = sshll.u32 %s1562_s23, 7  ;;  %p1983_p9 = scmp.lt.s32.totalorder %s1981_s21, %s1975_s16 }
 0x13f   : > { %v983_v56 = vmul.f32 %v2315_v10, %v2742_v33  ;;  %v984_v53 = vmul.f32 %v2315_v10, %v2713_v20  ;;  %v1936_v52 = vpop.eup %1935  ;;  %v985_v37 = vmul.f32 %v2315_v10, %v2687_v24  ;;  %v986_v22 = vmul.f32 %v2315_v10, %v2660_v46  ;;  %s3379_s28 = scalar_lea.hbm %s3447_s7, %s1701_s9 }
 0x140   : > { %v997_v30 = vadd.f32 %v981_v11, %v961_v32  ;;  %v998_v34 = vadd.f32 %v982_v17, %v962_v51  ;;  %v2839_v4 = vmul.f32 %v701_v61, %v2422_v15  ;;  %v699_v6 = vmul.f32 0.5, %v679_v29  ;;  %v1938_v28 = vpop.eup %1937  ;;  %p1984_p10 = por %p1983_p9, %p1982_p7 }
 0x141   : > { %v684_v45 = vadd.f32 1.0, %v1936_v52  ;;  %v999_v43 = vadd.f32 %v983_v56, %v963_v41  ;;  %v2841_v35 = vadd.f32 %v917_v40, %v897_v25  ;;  %v1000_v59 = vadd.f32 %v984_v53, %v964_v26 }
 0x142   : > { %v2843_v27 = vadd.f32 %v985_v37, %v965_v0  ;;  %v2845_v2 = vadd.f32 %v986_v22, %v966_v31  ;;  %v762_v24 = vrot.slane %v2839_v4, 7  ;;  %v829_v46 = vrot.slane %v2839_v4, 1  ;;  %p1985_p11 = pnand %p1984_p10, %p1978_p6 }
 0x143   : > { %v920_v51 = vmul.f32 %v2261_v39, %v2839_v4  ;;  %v1033_v15 = vadd.f32 %v2490_v44, %v997_v30  ;;  %v2854_v32 = vmul.f32 %v2270_v47, %v2839_v4  ;;  %v2857_v40 = vmul.f32 %v699_v6, %v2637_v50 }
 0x144   : > { %v704_v0 = vmul.f32 0.5, %v684_v45  ;;  %v682_v26 = vadd.f32 1.0, %v1938_v28  ;;  %v1940_v31 = vpop.eup %1939  ;;  %v3524_v25 = vrot.slane %v2708_v49, 7  ;;  %v3525_v11 = vrot.slane %v2708_v49, 1 }
 0x145   : > { %3523 = vst [vmem:[#allocation36_spill] sm:$0xff] %v2854_v32  ;;  %v1034_v17 = vadd.f32 %v2548_v38, %v998_v34  ;;  %v1035_v50 = vadd.f32 %v2641_v12, %v999_v43  ;;  %v760_v56 = vrot.slane %v2857_v40, 7  ;;  %v2881_v53 = vadd.f32 %v2674_v42, %v1000_v59 }
 0x146   : > { %v2863_v41 = vsel %vm767_vm2, %v3524_v25, %v762_v24  ;;  %v2869_v44 = vsel %vm834_vm3, %v3525_v11, %v829_v46  ;;  %v918_v37 = vmul.f32 %v2261_v39, %v2857_v40  ;;  %v724_v38 = vmul.f32 %v704_v0, %v2666_v60  ;;  %v1942_v22 = vpop.eup %1941 }
 0x147   : > { %v900_v61 = vmul.f32 %v2277_v48, %v2863_v41  ;;  %v2877_v29 = vmul.f32 %v2315_v10, %v2863_v41  ;;  %v702_v12 = vmul.f32 0.5, %v682_v26  ;;  %v3527_v34 = vmov %v3524_v25 }
 0x148   : > { %v773_v6 = vsel %vm767_vm2, %v760_v56, %v3527_v34  ;;  %v3528_v45 = vrot.slane %v2746_v1, 7  ;;  %v2899_v59 = vmul.f32 %v2270_v47, %v2857_v40  ;;  %v2909_v43 = vsel %vm2822_vm6, 0.0, %v724_v38 }
 0x149   : > { %3526 = vst [vmem:[#allocation37_spill] sm:$0xff] %v2877_v29  ;;  %v936_v30 = vadd.f32 %v920_v51, %v900_v61  ;;  %v2903_v39 = vsel %vm745_vm4, 0.0, %v773_v6  ;;  %v955_v28 = vmul.f32 %v2289_v57, %v2869_v44  ;;  %v765_v0 = vrot.slane %v2909_v43, 7 }
 0x14a   : > { %v2895_v42 = vsel %vm767_vm2, %v3528_v45, %v760_v56  ;;  %v2920_v25 = vmul.f32 %v702_v12, %v2677_v9  ;;  %v2924_v11 = vmul.f32 %v2356_v54, %v2909_v43  ;;  %v899_v61 = vmul.f32 %v2277_v48, %v2903_v39 }
 0x14b   : > { %v898_v60 = vmul.f32 %v2277_v48, %v2895_v42  ;;  %v2915_v51 = vmul.f32 %v2315_v10, %v2895_v42  ;;  %v685_v56 = vadd.f32 1.0, %v1940_v31  ;;  %v683_v38 = vadd.f32 1.0, %v1942_v22 }
 0x14c   : > { %3529 = vst [vmem:[#allocation38_spill] sm:$0xff] %v2920_v25  ;;  %3530 = vst [vmem:[#allocation39_spill] sm:$0xff] %v2924_v11  ;;  %v763_v6 = vrot.slane %v2920_v25, 7  ;;  %v3473_v45 = vrot.slane %v2920_v25, 1  ;;  %v1027_v52 = vmul.f32 %v2270_v47, %v2920_v25  ;;  %v935_v9 = vadd.f32 %v2721_v7, %v899_v61 }
 0x14d   : > { %v2928_v34 = vadd.f32 %v918_v37, %v898_v60  ;;  %v705_v12 = vmul.f32 0.5, %v685_v56  ;;  %v703_v26 = vmul.f32 0.5, %v683_v38  ;;  %v1053_v11 = vmul.f32 %v2292_v58, %v2764_v63 }
 0x14e   : > { %v771_v31 = vsel %vm767_vm2, %v762_v24, %v763_v6  ;;  %v838_v37 = vsel %vm834_vm3, %v829_v46, %v3473_v45  ;;  %v1054_v22 = vmul.f32 %v2292_v58, %v2780_v55  ;;  %v1055_v60 = vmul.f32 %v2292_v58, %v2772_v16 }
 0x14f   : > { %v2949_v7 = vsel %vm745_vm4, 0.0, %v771_v31  ;;  %v2953_v61 = vsel %vm813_vm5, 0.0, %v838_v37  ;;  %v971_v24 = vadd.f32 %v955_v28, %v935_v9  ;;  %v725_v56 = vmul.f32 %v705_v12, %v2692_v13 }
 0x150   : > { %3531 = vst [vmem:[#allocation40_spill] sm:$0xff] %v2949_v7  ;;  %v956_v46 = vmul.f32 %v2289_v57, %v2953_v61  ;;  %v991_v38 = vmul.f32 %v2315_v10, %v2949_v7  ;;  %v2962_v45 = vmul.f32 %v2356_v54, %v2920_v25  ;;  %v2965_v31 = vmul.f32 %v703_v26, %v2697_v8 }
 0x151   : > { %v744_v37 = vsel %vm2822_vm6, 0.0, %v725_v56  ;;  %v1056_v28 = vmul.f32 %v2292_v58, %v2792_v18  ;;  %v1069_v13 = vadd.f32 %v1053_v11, %v1033_v15  ;;  %v1070_v9 = vadd.f32 %v1054_v22, %v1034_v17 }
 0x152   : > { %3532 = vst [vmem:[#allocation41_spill] sm:$0xff] %v2962_v45  ;;  %v1007_v12 = vadd.f32 %v991_v38, %v971_v24  ;;  %v766_v55 = vrot.slane %v744_v37, 7  ;;  %v833_v32 = vrot.slane %v744_v37, 1  ;;  %v1071_v29 = vadd.f32 %v1055_v60, %v1035_v50 }
 0x153   : > { %v2972_v7 = vmul.f32 %v2356_v54, %v744_v37  ;;  %v764_v45 = vrot.slane %v2965_v31, 7  ;;  %v972_v26 = vadd.f32 %v956_v46, %v936_v30  ;;  %v3533_v15 = vrot.slane %v2410_v3, 7 }
 0x154   : > { %v2976_v25 = vadd.f32 %v1027_v52, %v1007_v12  ;;  %v768_v36 = vsel %vm767_vm2, %v765_v0, %v766_v55  ;;  %v1028_v50 = vmul.f32 %v2270_v47, %v2965_v31  ;;  %v3534_v22 = vrot.slane %v2909_v43, 1 }
 0x155   : > { %v787_v17 = vsel %vm767_vm2, %v766_v55, %v3533_v15  ;;  %v3535_v30 = vrot.slane %v2410_v3, 1  ;;  %v769_v55 = vsel %vm767_vm2, %v764_v45, %v765_v0  ;;  %v3006_v56 = vmul.f32 %v2368_v5, %v768_v36  ;;  %v3015_v3 = vld [vmem:[%s3443_s3 + $0x8] ss:$0 sm:$0xff] }
 0x156   : > { %v792_v11 = vsel %vm745_vm4, 0.0, %v787_v17  ;;  %v2992_v52 = vsel %vm834_vm3, %v3534_v22, %v833_v32  ;;  %v3010_v46 = vsel %vm767_vm2, %v763_v6, %v764_v45  ;;  %v3025_v38 = vmul.f32 %v2356_v54, %v2965_v31 }
 0x157   : > { %v854_v60 = vsel %vm834_vm3, %v833_v32, %v3535_v30  ;;  %v885_v24 = vmul.f32 %v2277_v48, %v792_v11  ;;  %v3019_v32 = vsel %vm745_vm4, 0.0, %v769_v55  ;;  %v992_v0 = vmul.f32 %v2315_v10, %v3010_v46  ;;  %v3537_v11 = vld [vmem:[#allocation26_spill] sm:$0xff] }
 0x158   : > { %v3002_v47 = vsel %vm813_vm5, 0.0, %v854_v60  ;;  %v1072_v37 = vadd.f32 %v1056_v28, %v2881_v53  ;;  %v3031_v45 = vmul.f32 %v2368_v5, %v2735_v23  ;;  %v1089_v12 = vmul.f32 %v2368_v5, %v2742_v33  ;;  %v3539_v53 = vld [vmem:[#allocation9_spill] sm:$0xff] }
 0x159   : > { %v921_v6 = vadd.f32 %v2419_v14, %v885_v24  ;;  %v1090_v36 = vmul.f32 %v2368_v5, %v2713_v20  ;;  %v1008_v15 = vadd.f32 %v992_v0, %v972_v26  ;;  %v1125_v17 = vmul.f32 %v2356_v54, %v2615_v62  ;;  %v3541_v26 = vld [vmem:[#allocation25_spill] sm:$0xff]  ;;  %v3544_v0 = vld [vmem:[#allocation18_spill] sm:$0xff] }
 0x15a   : > { %3536 = vst [vmem:[#allocation42_spill] sm:$0xff] %v3031_v45  ;;  %v1126_v22 = vmul.f32 %v2356_v54, %v3537_v11  ;;  %v3043_v14 = vmul.f32 %v3015_v3, %v2764_v63  ;;  %v1105_v28 = vadd.f32 %v1089_v12, %v1069_v13  ;;  %v1161_v33 = vmul.f32 %v3015_v3, %v2772_v16  ;;  %v3546_v16 = vld [vmem:[#allocation10_spill] sm:$0xff] }
 0x15b   : > { %v957_v23 = vadd.f32 %v3539_v53, %v921_v6  ;;  %v1106_v30 = vadd.f32 %v1090_v36, %v1070_v9  ;;  %v3048_v60 = vadd.f32 %v1028_v50, %v1008_v15  ;;  %v1162_v20 = vmul.f32 %v3015_v3, %v2792_v18  ;;  %v3547_v36 = vld [vmem:[#allocation30_spill] sm:$0xff] }
 0x15c   : > { %3538 = vst [vmem:[#allocation26_spill] sm:$0xff] %v3043_v14  ;;  %v3540_v62 = vrot.slane %v2746_v1, 1  ;;  %v3542_v55 = vrot.slane %v3541_v26, 1  ;;  %v3545_v13 = vrot.slane %v3544_v0, 1  ;;  %v1141_v6 = vadd.f32 %v1125_v17, %v1105_v28  ;;  %v3549_v28 = vld [vmem:[#allocation31_spill] sm:$0xff] }
 0x15d   : > { %v3065_v50 = vadd.f32 %v3546_v16, %v957_v23  ;;  %v1142_v12 = vadd.f32 %v1126_v22, %v1106_v30  ;;  %v895_v15 = vmul.f32 %v2277_v48, %v3547_v36  ;;  %v1091_v17 = vmul.f32 %v2368_v5, %v3547_v36  ;;  %v3080_v22 = vld [vmem:[%s3444_s4] ss:$0 sm:$0xff] }
 0x15e   : > { %v842_v63 = vsel %vm834_vm3, %v3542_v55, %v3540_v62  ;;  %v3543_v24 = vmov %v3542_v55  ;;  %v1177_v55 = vadd.f32 %v1161_v33, %v1141_v6  ;;  %v3548_v23 = vld [vmem:[#allocation19_spill] sm:$0xff]  ;;  %v1127_v33 = vmul.f32 %v2356_v54, %v3544_v0 }
 0x15f   : > { %v843_v9 = vsel %vm834_vm3, %v3545_v13, %v3543_v24  ;;  %v870_v18 = vsel %vm813_vm5, 0.0, %v842_v63  ;;  %v1178_v8 = vadd.f32 %v1162_v20, %v1142_v12  ;;  %v931_v48 = vadd.f32 %v3548_v23, %v895_v15  ;;  %v3550_v63 = vld [vmem:[#allocation28_spill] sm:$0xff] }
 0x160   : > { %v951_v11 = vmul.f32 %v2289_v57, %v843_v9  ;;  %v952_v53 = vmul.f32 %v2289_v57, %v870_v18  ;;  %v1057_v62 = vmul.f32 %v2292_v58, %v843_v9  ;;  %v1058_v24 = vmul.f32 %v2292_v58, %v870_v18 }
 0x161   : > { %v1092_v13 = vmul.f32 %v2368_v5, %v3550_v63  ;;  %v3089_v20 = vadd.f32 %v3080_v22, %v1177_v55  ;;  %v3092_v16 = vadd.f32 %v3080_v22, %v1178_v8  ;;  %v1107_v6 = vadd.f32 %v1091_v17, %v1071_v29 }
 0x162   : > { %v968_v30 = vadd.f32 %v952_v53, %v3549_v28  ;;  %v1128_v12 = vmul.f32 %v2356_v54, %v3541_v26  ;;  %v967_v36 = vadd.f32 %v951_v11, %v931_v48  ;;  %v1163_v53 = vmul.f32 %v3015_v3, %v843_v9  ;;  %v3555_v48 = vld [vmem:[#allocation22_spill] sm:$0xff] }
 0x163   : > { %v1108_v15 = vadd.f32 %v1092_v13, %v1072_v37  ;;  %v1164_v23 = vmul.f32 %v3015_v3, %v870_v18  ;;  %v1216_v28 = vmul.f32 %v3089_v20, %v3089_v20  ;;  %v1217_v0 = vmul.f32 %v3092_v16, %v3092_v16 }
 0x164   : > { %v1143_v55 = vadd.f32 %v1127_v33, %v1107_v6  ;;  %v3551_v8 = vrot.slane %v2708_v49, 1  ;;  %v3552_v29 = vrot.slane %v2857_v40, 1  ;;  %v3554_v9 = vrot.slane %v2746_v1, 1 }
 0x165   : > { %v1144_v11 = vadd.f32 %v1128_v12, %v1108_v15  ;;  %v1037_v63 = vadd.f32 %v3555_v48, %v2843_v27  ;;  %v1232_v13 = vmul.f32 %v1216_v28, %v3089_v20  ;;  %v1233_v33 = vmul.f32 %v1217_v0, %v3092_v16  ;;  %v3557_v48 = vld [vmem:[#allocation35_spill] sm:$0xff] }
 0x166   : > { %v840_v26 = vsel %vm834_vm3, %v3552_v29, %v3551_v8  ;;  %v3553_v37 = vmov %v3552_v29  ;;  %v1179_v6 = vadd.f32 %v1163_v53, %v1143_v55  ;;  %v3556_v29 = vld [vmem:[#allocation27_spill] sm:$0xff] }
 0x167   : > { %v841_v18 = vsel %vm834_vm3, %v3554_v9, %v3553_v37  ;;  %v872_v17 = vsel %vm813_vm5, 0.0, %v840_v26  ;;  %v1180_v15 = vadd.f32 %v1164_v23, %v1144_v11  ;;  %v1038_v14 = vadd.f32 %v3556_v29, %v2845_v2 }
 0x168   : > { %v953_v12 = vmul.f32 %v2289_v57, %v841_v18  ;;  %v954_v8 = vmul.f32 %v2289_v57, %v872_v17  ;;  %v1059_v37 = vmul.f32 %v2292_v58, %v841_v18  ;;  %v1248_v9 = vmul.f32 0.044715, %v1232_v13 }
 0x169   : > { %v1249_v26 = vmul.f32 0.044715, %v1233_v33  ;;  %v3126_v45 = vadd.f32 %v3080_v22, %v1179_v6  ;;  %v3132_v53 = vadd.f32 %v3080_v22, %v1180_v15  ;;  %v1060_v57 = vmul.f32 %v2292_v58, %v872_v17 }
 0x16a   : > { %v3129_v27 = vadd.f32 %v953_v12, %v2841_v35  ;;  %v970_v23 = vadd.f32 %v954_v8, %v2928_v34  ;;  %v1073_v28 = vadd.f32 %v1057_v62, %v1037_v63  ;;  %v1264_v2 = vadd.f32 %v1248_v9, %v3089_v20 }
 0x16b   : > { %v1265_v0 = vadd.f32 %v1249_v26, %v3092_v16  ;;  %v1218_v55 = vmul.f32 %v3126_v45, %v3126_v45  ;;  %v1074_v11 = vadd.f32 %v1058_v24, %v1038_v14  ;;  %v1219_v35 = vmul.f32 %v3132_v53, %v3132_v53 }
 0x16c   : > { %v1093_v13 = vmul.f32 %v2368_v5, %v3557_v48  ;;  %v1094_v34 = vmul.f32 %v2368_v5, %v2895_v42  ;;  %v1129_v62 = vmul.f32 %v2356_v54, %v2746_v1  ;;  %v1280_v63 = vmul.f32 0.7978846, %v1264_v2 }
 0x16d   : > { %v1281_v33 = vmul.f32 0.7978846, %v1265_v0  ;;  %v1234_v6 = vmul.f32 %v1218_v55, %v3126_v45  ;;  %v1130_v12 = vmul.f32 %v2356_v54, %v2857_v40  ;;  %v1235_v14 = vmul.f32 %v1219_v35, %v3132_v53 }
 0x16e   : > { %v1109_v24 = vadd.f32 %v1093_v13, %v1073_v28  ;;  %v1110_v15 = vadd.f32 %v1094_v34, %v1074_v11  ;;  %v1165_v8 = vmul.f32 %v3015_v3, %v841_v18  ;;  %1943 = vtanh.f32 %v1280_v63  ;;  %v3558_v13 = vld [vmem:[#allocation33_spill] sm:$0xff] }
 0x16f   : > { %v1250_v29 = vmul.f32 0.044715, %v1234_v6  ;;  %v1166_v42 = vmul.f32 %v3015_v3, %v872_v17  ;;  %v987_v1 = vmul.f32 %v2315_v10, %v3557_v48  ;;  %1945 = vtanh.f32 %v1281_v33 }
 0x170   : > { %v1251_v9 = vmul.f32 0.044715, %v1235_v14  ;;  %v1145_v26 = vadd.f32 %v1129_v62, %v1109_v24  ;;  %v1146_v2 = vadd.f32 %v1130_v12, %v1110_v15  ;;  %v1004_v55 = vadd.f32 %v2915_v51, %v968_v30 }
 0x171   : > { %v1266_v0 = vadd.f32 %v1250_v29, %v3126_v45  ;;  %v1003_v40 = vadd.f32 %v987_v1, %v967_v36  ;;  %v1095_v28 = vmul.f32 %v2368_v5, %v2903_v39  ;;  %v1096_v17 = vmul.f32 %v2368_v5, %v2863_v41  ;;  %v3562_v29 = vld [vmem:[#allocation38_spill] sm:$0xff] }
 0x172   : > { %v1267_v18 = vadd.f32 %v1251_v9, %v3132_v53  ;;  %v1181_v11 = vadd.f32 %v1165_v8, %v1145_v26  ;;  %v1182_v35 = vadd.f32 %v1166_v42, %v1146_v2  ;;  %v1040_v62 = vadd.f32 %v2899_v59, %v1004_v55  ;;  %v3564_v55 = vld [vmem:[#allocation37_spill] sm:$0xff] }
 0x173   : > { %v1282_v48 = vmul.f32 0.7978846, %v1266_v0  ;;  %v1039_v34 = vadd.f32 %v3558_v13, %v1003_v40  ;;  %v1131_v36 = vmul.f32 %v2356_v54, %v2708_v49  ;;  %v1132_v33 = vmul.f32 %v2356_v54, %v2839_v4 }
 0x174   : > { %v1283_v63 = vmul.f32 0.7978846, %v1267_v18  ;;  %v3168_v51 = vadd.f32 %v3080_v22, %v1181_v11  ;;  %v3171_v30 = vadd.f32 %v3080_v22, %v1182_v35  ;;  %v1076_v6 = vadd.f32 %v1060_v57, %v1040_v62  ;;  %v3566_v62 = vld [vmem:[#allocation32_spill] sm:$0xff] }
 0x175   : > { %1947 = vtanh.f32 %v1282_v48  ;;  %v1075_v41 = vadd.f32 %v1059_v37, %v1039_v34  ;;  %v1167_v12 = vmul.f32 %v3015_v3, %v2869_v44  ;;  %v1168_v14 = vmul.f32 %v3015_v3, %v2953_v61  ;;  %v3565_v48 = vld [vmem:[#allocation36_spill] sm:$0xff] }
 0x176   : > { %1949 = vtanh.f32 %v1283_v63  ;;  %v1220_v49 = vmul.f32 %v3168_v51, %v3168_v51  ;;  %v1221_v59 = vmul.f32 %v3171_v30, %v3171_v30  ;;  %v1112_v15 = vadd.f32 %v1096_v17, %v1076_v6 }
 0x177   : > { %v1111_v24 = vadd.f32 %v1095_v28, %v1075_v41  ;;  %v3559_v4 = vrot.slane %v2909_v43, 1  ;;  %v3560_v37 = vrot.slane %v2965_v31, 1  ;;  %v3563_v42 = vrot.slane %v3562_v29, 1 }
 0x178   : > { %v1236_v9 = vmul.f32 %v1220_v49, %v3168_v51  ;;  %v1237_v26 = vmul.f32 %v1221_v59, %v3171_v30  ;;  %v989_v43 = vmul.f32 %v2315_v10, %v2903_v39  ;;  %v1148_v40 = vadd.f32 %v1132_v33, %v1112_v15 }
 0x179   : > { %v836_v57 = vsel %vm834_vm3, %v3560_v37, %v3559_v4  ;;  %v3561_v8 = vmov %v3560_v37  ;;  %v1147_v0 = vadd.f32 %v1131_v36, %v1111_v24  ;;  %v1006_v28 = vadd.f32 %v3564_v55, %v970_v23  ;;  %v3567_v4 = vld [vmem:[#allocation40_spill] sm:$0xff] }
 0x17a   : > { %v837_v1 = vsel %vm834_vm3, %v3563_v42, %v3561_v8  ;;  %v876_v2 = vsel %vm813_vm5, 0.0, %v836_v57  ;;  %v1061_v31 = vmul.f32 %v2292_v58, %v2869_v44  ;;  %v1252_v18 = vmul.f32 0.044715, %v1236_v9 }
 0x17b   : > { %v1253_v19 = vmul.f32 0.044715, %v1237_v26  ;;  %v1005_v11 = vadd.f32 %v989_v43, %v3129_v27  ;;  %v1062_v35 = vmul.f32 %v2292_v58, %v2953_v61  ;;  %v1183_v17 = vadd.f32 %v1167_v12, %v1147_v0  ;;  %v1944_v39 = vpop.eup %1943 }
 0x17c   : > { %v1184_v21 = vadd.f32 %v1168_v14, %v1148_v40  ;;  %v1042_v13 = vadd.f32 %v3565_v48, %v1006_v28  ;;  %v1063_v10 = vmul.f32 %v2292_v58, %v837_v1  ;;  %v1268_v34 = vadd.f32 %v1252_v18, %v3168_v51  ;;  %v1946_v63 = vpop.eup %1945 }
 0x17d   : > { %v1269_v23 = vadd.f32 %v1253_v19, %v3171_v30  ;;  %v1041_v44 = vadd.f32 %v3566_v62, %v1005_v11  ;;  %v1064_v36 = vmul.f32 %v2292_v58, %v876_v2  ;;  %v1312_v27 = vadd.f32 1.0, %v1944_v39 }
 0x17e   : > { %v3214_v33 = vadd.f32 %v3080_v22, %v1183_v17  ;;  %v3217_v61 = vadd.f32 %v3080_v22, %v1184_v21  ;;  %v1078_v41 = vadd.f32 %v1062_v35, %v1042_v13  ;;  %v1313_v6 = vadd.f32 1.0, %v1946_v63  ;;  %v3568_v35 = vld [vmem:[#allocation41_spill] sm:$0xff] }
 0x17f   : > { %v1284_v12 = vmul.f32 0.7978846, %v1268_v34  ;;  %v1285_v49 = vmul.f32 0.7978846, %v1269_v23  ;;  %v1077_v59 = vadd.f32 %v1061_v31, %v1041_v44  ;;  %v1328_v14 = vmul.f32 0.5, %v1312_v27 }
 0x180   : > { %v1222_v24 = vmul.f32 %v3214_v33, %v3214_v33  ;;  %v1223_v15 = vmul.f32 %v3217_v61, %v3217_v61  ;;  %v1097_v37 = vmul.f32 %v2368_v5, %v3567_v4  ;;  %v1329_v57 = vmul.f32 0.5, %v1313_v6  ;;  %v3572_v4 = vld [vmem:[#allocation14_spill] sm:$0xff] }
 0x181   : > { %1951 = vtanh.f32 %v1284_v12  ;;  %v1098_v8 = vmul.f32 %v2368_v5, %v3010_v46  ;;  %v1169_v29 = vmul.f32 %v3015_v3, %v837_v1  ;;  %v1344_v42 = vmul.f32 %v1328_v14, %v3089_v20  ;;  %v3569_v12 = vld [vmem:[#allocation39_spill] sm:$0xff] }
 0x182   : > { %1953 = vtanh.f32 %v1285_v49  ;;  %v1238_v9 = vmul.f32 %v1222_v24, %v3214_v33  ;;  %v1239_v26 = vmul.f32 %v1223_v15, %v3217_v61  ;;  %v1948_v43 = vpop.eup %1947  ;;  %v1345_v0 = vmul.f32 %v1329_v57, %v3092_v16  ;;  %v3570_v14 = vld [vmem:[#allocation7_spill] sm:$0xff]  ;;  %v3573_v57 = vld [vmem:[#allocation20_spill] sm:$0xff] }
 0x183   : > { %v1113_v40 = vadd.f32 %v1097_v37, %v1077_v59  ;;  %v1114_v55 = vadd.f32 %v1098_v8, %v1078_v41  ;;  %v1170_v28 = vmul.f32 %v3015_v3, %v876_v2  ;;  %v1950_v31 = vpop.eup %1949  ;;  %v1314_v18 = vadd.f32 1.0, %v1948_v43  ;;  %v3571_v24 = vld [vmem:[#allocation15_spill] sm:$0xff]  ;;  %v3575_v43 = vld [vmem:[#allocation13_spill] sm:$0xff] }
 0x184   : > { %v1254_v19 = vmul.f32 0.044715, %v1238_v9  ;;  %v1255_v46 = vmul.f32 0.044715, %v1239_v26  ;;  %v1079_v1 = vadd.f32 %v1063_v10, %v2976_v25  ;;  %v1358_v11 = vpack.c.bf16 %v1345_v0, %v1344_v42 }
 0x185   : > { %v1315_v20 = vadd.f32 1.0, %v1950_v31  ;;  %v1149_v17 = vadd.f32 %v3568_v35, %v1113_v40  ;;  %v1150_v21 = vadd.f32 %v3025_v38, %v1114_v55  ;;  %v1330_v48 = vmul.f32 0.5, %v1314_v18  ;;  %v3576_v31 = vld [vmem:[#allocation11_spill] sm:$0xff] }
 0x186   : > { %v1270_v13 = vadd.f32 %v1254_v19, %v3214_v33  ;;  %v1271_v16 = vadd.f32 %v1255_v46, %v3217_v61  ;;  %v1080_v39 = vadd.f32 %v1064_v36, %v3048_v60  ;;  %1782 = vmatprep.mubr.bf16.mxu1 %v1358_v11  ;;  %v1099_v25 = vmul.f32 %v2368_v5, %v3019_v32 }
 0x187   : > { %v1331_v2 = vmul.f32 0.5, %v1315_v20  ;;  %v1185_v34 = vadd.f32 %v1169_v29, %v1149_v17  ;;  %v1186_v23 = vadd.f32 %v1170_v28, %v1150_v21  ;;  %v1346_v10 = vmul.f32 %v1330_v48, %v3126_v45 }
 0x188   : > { %v1286_v62 = vmul.f32 0.7978846, %v1270_v13  ;;  %v1287_v44 = vmul.f32 0.7978846, %v1271_v16  ;;  %v1116_v38 = vadd.f32 %v3006_v56, %v1080_v39  ;;  %v1115_v36 = vadd.f32 %v1099_v25, %v1079_v1  ;;  %v3577_v16 = vld [vmem:[#allocation17_spill] sm:$0xff] }
 0x189   : > { %v1347_v63 = vmul.f32 %v1331_v2, %v3132_v53  ;;  %v3245_v27 = vadd.f32 %v3080_v22, %v1185_v34  ;;  %v3248_v60 = vadd.f32 %v3080_v22, %v1186_v23  ;;  %v1171_v32 = vmul.f32 %v3015_v3, %v2992_v52 }
 0x18a   : > { %1955 = vtanh.f32 %v1286_v62  ;;  %v1152_v41 = vadd.f32 %v2972_v7, %v1116_v38  ;;  %v1172_v45 = vmul.f32 %v3015_v3, %v3002_v47  ;;  %v1151_v49 = vadd.f32 %v3569_v12, %v1115_v36 }
 0x18b   : > { %v1359_v6 = vpack.c.bf16 %v1347_v63, %v1346_v10  ;;  %1957 = vtanh.f32 %v1287_v44  ;;  %v1224_v56 = vmul.f32 %v3245_v27, %v3245_v27  ;;  %v1225_v53 = vmul.f32 %v3248_v60, %v3248_v60  ;;  %v3578_v63 = vld [vmem:[#allocation21_spill] sm:$0xff] }
 0x18c   : > { %v1188_v59 = vadd.f32 %v1172_v45, %v1152_v41  ;;  %v1029_v7 = vadd.f32 %v3570_v14, %v3065_v50  ;;  %v1050_v52 = vmul.f32 %v2292_v58, %v3571_v24  ;;  %v1085_v37 = vmul.f32 %v2368_v5, %v3572_v4  ;;  %v3574_v50 = vld [vmem:[#allocation8_spill] sm:$0xff]  ;;  %v3579_v41 = vld [vmem:[#allocation23_spill] sm:$0xff] }
 0x18d   : > { %1783 = vmatmul.mubr.bf16.vlgmr.msra.gmra.mxu1 %v1359_v6  ;;  %v1240_v47 = vmul.f32 %v1224_v56, %v3245_v27  ;;  %v1241_v15 = vmul.f32 %v1225_v53, %v3248_v60  ;;  %v1086_v8 = vmul.f32 %v2368_v5, %v3573_v57  ;;  %v1187_v42 = vadd.f32 %v1171_v32, %v1151_v49  ;;  %v3580_v45 = vld [vmem:[#allocation24_spill] sm:$0xff] }
 0x18e   : > { %v1952_v29 = vpop.eup %1951  ;;  %v3271_v9 = vadd.f32 %v3080_v22, %v1188_v59  ;;  %v1065_v26 = vadd.f32 %v3574_v50, %v1029_v7  ;;  %v1066_v58 = vadd.f32 %v1050_v52, %v3575_v43  ;;  %v1121_v18 = vmul.f32 %v2356_v54, %v3576_v31  ;;  %v3582_v59 = vld [vmem:[#allocation12_spill] sm:$0xff]  ;;  %v3583_v7 = vld [vmem:[#allocation29_spill] sm:$0xff] }
 0x18f   : > { %v1954_v0 = vpop.eup %1953  ;;  %v1316_v40 = vadd.f32 1.0, %v1952_v29  ;;  %v1256_v55 = vmul.f32 0.044715, %v1240_v47  ;;  %v1257_v28 = vmul.f32 0.044715, %v1241_v15  ;;  %v3278_v46 = vadd.f32 %v3080_v22, %v1187_v42  ;;  %v3584_v24 = vld [vmem:[#allocation16_spill] sm:$0xff] }
 0x190   : > { %v1317_v19 = vadd.f32 1.0, %v1954_v0  ;;  %v1227_v5 = vmul.f32 %v3271_v9, %v3271_v9  ;;  %v1101_v1 = vadd.f32 %v1085_v37, %v1065_v26  ;;  %v1102_v17 = vadd.f32 %v1086_v8, %v1066_v58  ;;  %v3585_v15 = vld [vmem:[#allocation34_spill] sm:$0xff] }
 0x191   : > { %v1332_v11 = vmul.f32 0.5, %v1316_v40  ;;  %v1272_v20 = vadd.f32 %v1256_v55, %v3245_v27  ;;  %v1273_v35 = vadd.f32 %v1257_v28, %v3248_v60  ;;  %v1226_v48 = vmul.f32 %v3278_v46, %v3278_v46  ;;  %v3586_v26 = vld [vmem:[#allocation26_spill] sm:$0xff] }
 0x192   : > { %v1333_v21 = vmul.f32 0.5, %v1317_v19  ;;  %v1243_v13 = vmul.f32 %v1227_v5, %v3271_v9  ;;  %v1122_v39 = vmul.f32 %v2356_v54, %v3577_v16  ;;  %v1137_v25 = vadd.f32 %v1121_v18, %v1101_v1  ;;  %v3581_v54 = vld [vmem:[#allocation42_spill] sm:$0xff] }
 0x193   : > { %v1348_v2 = vmul.f32 %v1332_v11, %v3168_v51  ;;  %v1288_v34 = vmul.f32 0.7978846, %v1272_v20  ;;  %v1289_v23 = vmul.f32 0.7978846, %v1273_v35  ;;  %v1242_v62 = vmul.f32 %v1226_v48, %v3278_v46 }
 0x194   : > { %v1349_v10 = vmul.f32 %v1333_v21, %v3171_v30  ;;  %v1259_v44 = vmul.f32 0.044715, %v1243_v13  ;;  %v1138_v38 = vadd.f32 %v1122_v39, %v1102_v17  ;;  %v1157_v36 = vmul.f32 %v3015_v3, %v3578_v63 }
 0x195   : > { %1959 = vtanh.f32 %v1288_v34  ;;  %v1158_v32 = vmul.f32 %v3015_v3, %v3579_v41  ;;  %v1103_v6 = vadd.f32 %v3581_v54, %v3580_v45  ;;  %v1258_v56 = vmul.f32 0.044715, %v1242_v62 }
 0x196   : > { %v1360_v51 = vpack.c.bf16 %v1349_v10, %v1348_v2  ;;  %1961 = vtanh.f32 %v1289_v23  ;;  %v1275_v53 = vadd.f32 %v1259_v44, %v3271_v9  ;;  %v1173_v12 = vadd.f32 %v1157_v36, %v1137_v25 }
 0x197   : > { %v1956_v30 = vpop.eup %1955  ;;  %v1174_v49 = vadd.f32 %v1158_v32, %v1138_v38  ;;  %v1139_v14 = vadd.f32 %v3582_v59, %v1103_v6  ;;  %v1140_v52 = vadd.f32 %v3584_v24, %v3583_v7  ;;  %v1160_v4 = vmul.f32 %v3015_v3, %v3585_v15 }
 0x198   : > { %v1958_v47 = vpop.eup %1957  ;;  %1786 = vmatprep.mubr.bf16.mxu1 %v1360_v51  ;;  %v1318_v37 = vadd.f32 1.0, %v1956_v30  ;;  %v1274_v57 = vadd.f32 %v1258_v56, %v3278_v46  ;;  %v1291_v8 = vmul.f32 0.7978846, %v1275_v53  ;;  %v3306_v42 = vadd.f32 %v3080_v22, %v1173_v12 }
 0x199   : > { %v1319_v29 = vadd.f32 1.0, %v1958_v47  ;;  %v3309_v50 = vadd.f32 %v3080_v22, %v1174_v49  ;;  %v1175_v43 = vadd.f32 %v3586_v26, %v1139_v14  ;;  %v1176_v40 = vadd.f32 %v1160_v4, %v1140_v52 }
 0x19a   : > { %v1334_v58 = vmul.f32 0.5, %v1318_v37  ;;  %v1290_v0 = vmul.f32 0.7978846, %v1274_v57  ;;  %1963 = vtanh.f32 %v1291_v8  ;;  %v1212_v3 = vmul.f32 %v3306_v42, %v3306_v42 }
 0x19b   : > { %v1335_v55 = vmul.f32 0.5, %v1319_v29  ;;  %v1213_v28 = vmul.f32 %v3309_v50, %v3309_v50  ;;  %v3317_v31 = vadd.f32 %v3080_v22, %v1175_v43  ;;  %v1199_v19 = vadd.f32 %v3080_v22, %v1176_v40 }
 0x19c   : > { %v1350_v18 = vmul.f32 %v1334_v58, %v3214_v33  ;;  %1965 = vtanh.f32 %v1290_v0  ;;  %v1228_v1 = vmul.f32 %v1212_v3, %v3306_v42 }
 0x19d   : > { %v1351_v5 = vmul.f32 %v1335_v55, %v3217_v61  ;;  %v1229_v11 = vmul.f32 %v1213_v28, %v3309_v50  ;;  %v1214_v20 = vmul.f32 %v3317_v31, %v3317_v31  ;;  %v1215_v35 = vmul.f32 %v1199_v19, %v1199_v19  ;;  %v1688_v55 = vld [vmem:[%s3446_s6] ss:$0 sm:$0xff] }
 0x19e   : > { %v1244_v21 = vmul.f32 0.044715, %v1228_v1 }
 0x19f   : > { %v1361_v17 = vpack.c.bf16 %v1351_v5, %v1350_v18  ;;  %v1245_v48 = vmul.f32 0.044715, %v1229_v11  ;;  %v1230_v13 = vmul.f32 %v1214_v20, %v3317_v31  ;;  %v1231_v16 = vmul.f32 %v1215_v35, %v1199_v19 }
 0x1a0   : > { %v1260_v33 = vadd.f32 %v1244_v21, %v3306_v42 }
 0x1a1   : > { %1787 = vmatmul.mubr.bf16.gmra.mxu1 %v1361_v17  ;;  %v1261_v22 = vadd.f32 %v1245_v48, %v3309_v50  ;;  %v1246_v61 = vmul.f32 0.044715, %v1230_v13  ;;  %v1247_v2 = vmul.f32 0.044715, %v1231_v16 }
 0x1a2   : > { %v1960_v39 = vpop.eup %1959  ;;  %v1276_v25 = vmul.f32 0.7978846, %v1260_v33 }
 0x1a3   : > { %v1962_v34 = vpop.eup %1961  ;;  %v1320_v23 = vadd.f32 1.0, %v1960_v39  ;;  %v1277_v10 = vmul.f32 0.7978846, %v1261_v22  ;;  %v1262_v62 = vadd.f32 %v1246_v61, %v3317_v31  ;;  %v1263_v38 = vadd.f32 %v1247_v2, %v1199_v19 }
 0x1a4   : > { %v1321_v44 = vadd.f32 1.0, %v1962_v34  ;;  %1967 = vtanh.f32 %v1276_v25 }
 0x1a5   : > { %v1336_v63 = vmul.f32 0.5, %v1320_v23  ;;  %v1278_v36 = vmul.f32 0.7978846, %v1262_v62  ;;  %1969 = vtanh.f32 %v1277_v10  ;;  %v1279_v32 = vmul.f32 0.7978846, %v1263_v38 }
 0x1a6   : > { %v1337_v41 = vmul.f32 0.5, %v1321_v44 }
 0x1a7   : > { %v1964_v45 = vpop.eup %1963  ;;  %1971 = vtanh.f32 %v1278_v36  ;;  %v1352_v54 = vmul.f32 %v1336_v63, %v3245_v27 }
 0x1a8   : > { %v1353_v6 = vmul.f32 %v1337_v41, %v3248_v60  ;;  %v1323_v51 = vadd.f32 1.0, %v1964_v45  ;;  %1973 = vtanh.f32 %v1279_v32 }
 0x1a9   : > { %v1966_v56 = vpop.eup %1965 }
 0x1aa   : > { %v1362_v53 = vpack.c.bf16 %v1353_v6, %v1352_v54  ;;  %v1322_v30 = vadd.f32 1.0, %v1966_v56  ;;  %v1339_v12 = vmul.f32 0.5, %v1323_v51 }
 0x1ac   : > { %1790 = vmatprep.mubr.bf16.mxu1 %v1362_v53  ;;  %v1338_v49 = vmul.f32 0.5, %v1322_v30  ;;  %v1355_v59 = vmul.f32 %v1339_v12, %v3271_v9 }
 0x1ae   : > { %v1354_v14 = vmul.f32 %v1338_v49, %v3278_v46 }
 0x1b0   : > { %v1363_v7 = vpack.c.bf16 %v1355_v59, %v1354_v14 }
 0x1b1   : > { %v1968_v24 = vpop.eup %1967 }
 0x1b2   : > { %1791 = vmatmul.mubr.bf16.gmra.mxu1 %v1363_v7  ;;  %v1970_v52 = vpop.eup %1969  ;;  %v1308_v47 = vadd.f32 1.0, %v1968_v24 }
 0x1b3   : > { %v1309_v15 = vadd.f32 1.0, %v1970_v52 }
 0x1b4   : > { %v1972_v27 = vpop.eup %1971  ;;  %v1324_v4 = vmul.f32 0.5, %v1308_v47 }
 0x1b5   : > { %v1974_v60 = vpop.eup %1973  ;;  %v1310_v37 = vadd.f32 1.0, %v1972_v27  ;;  %v1325_v57 = vmul.f32 0.5, %v1309_v15 }
 0x1b6   : > { %v1311_v8 = vadd.f32 1.0, %v1974_v60  ;;  %v1340_v29 = vmul.f32 %v1324_v4, %v3306_v42 }
 0x1b7   : > { %v1326_v26 = vmul.f32 0.5, %v1310_v37  ;;  %v1341_v9 = vmul.f32 %v1325_v57, %v3309_v50 }
 0x1b8   : > { %v1327_v46 = vmul.f32 0.5, %v1311_v8 }
 0x1b9   : > { %v1356_v43 = vpack.c.bf16 %v1341_v9, %v1340_v29  ;;  %v1342_v58 = vmul.f32 %v1326_v26, %v3317_v31 }
 0x1ba   : > { %v1343_v0 = vmul.f32 %v1327_v46, %v1199_v19 }
 0x1bb   : > { %1778 = vmatprep.mubr.bf16.mxu0 %v1356_v43 }
 0x1bc   : > { %v1357_v40 = vpack.c.bf16 %v1343_v0, %v1342_v58 }
 0x1be   : > { %1779 = vmatmul.mubr.bf16.vlgmr.msra.gmra.mxu0 %v1357_v40 }
 0x24d   : > { %v1784_v3 = vpop.f32.mrf.mxu1 }
 0x24e   : > { %v1494_v42 = vadd.f32 %v1784_v3, %v1688_v55 }
 0x24f   : > { %v1485_v28 = vpop.f32.mrf.mxu1 }
 0x250   : > { %1538 = vst.msk [vmem:[%s3343_s20 + $0x30] sm:$0xff] %vm402_vm0, %v1494_v42  ;;  %v1486_v50 = vadd.f32 %v1688_v55, %v1485_v28 }
 0x251   : > { %v1785_v31 = vpop.f32.mrf.mxu1 }
 0x252   : > { %1536 = vst.msk [vmem:[%s3343_s20 + $0x20] sm:$0xff] %vm402_vm0, %v1486_v50  ;;  %v1497_v18 = vadd.f32 %v1785_v31, %v1688_v55 }
 0x253   : > { %v1488_v19 = vpop.f32.mrf.mxu1 }
 0x254   : > { %1539 = vst.msk [vmem:[%s3343_s20 + $0x38] sm:$0xff] %vm402_vm0, %v1497_v18  ;;  %v1489_v5 = vadd.f32 %v1688_v55, %v1488_v19 }
 0x256   : > { %1537 = vst.msk [vmem:[%s3343_s20 + $0x28] sm:$0xff] %vm402_vm0, %v1489_v5 }
 0x261   : > { %v1788_v1 = vpop.f32.mrf.mxu1 }
 0x262   : > { %v1510_v11 = vadd.f32 %v1788_v1, %v1688_v55 }
 0x263   : > { %v1501_v20 = vpop.f32.mrf.mxu1 }
 0x264   : > { %1542 = vst.msk [vmem:[%s3343_s20 + $0x50] sm:$0xff] %vm402_vm0, %v1510_v11  ;;  %v1502_v35 = vadd.f32 %v1688_v55, %v1501_v20 }
 0x265   : > { %v1789_v17 = vpop.f32.mrf.mxu1 }
 0x266   : > { %1540 = vst.msk [vmem:[%s3343_s20 + $0x40] sm:$0xff] %vm402_vm0, %v1502_v35  ;;  %v1513_v21 = vadd.f32 %v1789_v17, %v1688_v55 }
 0x267   : > { %v1504_v48 = vpop.f32.mrf.mxu1 }
 0x268   : > { %1543 = vst.msk [vmem:[%s3343_s20 + $0x58] sm:$0xff] %vm402_vm0, %v1513_v21  ;;  %v1505_v13 = vadd.f32 %v1688_v55, %v1504_v48 }
 0x26a   : > { %1541 = vst.msk [vmem:[%s3343_s20 + $0x48] sm:$0xff] %vm402_vm0, %v1505_v13 }
 0x272   : > { %v1792_v16 = vpop.f32.mrf.mxu1 }
 0x273   : > { %v1526_v33 = vadd.f32 %v1792_v16, %v1688_v55 }
 0x274   : > { %v1517_v22 = vpop.f32.mrf.mxu1 }
 0x275   : > { %1546 = vst.msk [vmem:[%s3343_s20 + $0x70] sm:$0xff] %vm402_vm0, %v1526_v33  ;;  %v1518_v61 = vadd.f32 %v1688_v55, %v1517_v22 }
 0x276   : > { %v1793_v39 = vpop.f32.mrf.mxu1 }
 0x277   : > { %1544 = vst.msk [vmem:[%s3343_s20 + $0x60] sm:$0xff] %vm402_vm0, %v1518_v61  ;;  %v1529_v2 = vadd.f32 %v1793_v39, %v1688_v55 }
 0x278   : > { %v1520_v34 = vpop.f32.mrf.mxu1 }
 0x279   : > { %1547 = vst.msk [vmem:[%s3343_s20 + $0x78] sm:$0xff] %vm402_vm0, %v1529_v2  ;;  %v1521_v23 = vadd.f32 %v1688_v55, %v1520_v34 }
 0x27b   : > { %1545 = vst.msk [vmem:[%s3343_s20 + $0x68] sm:$0xff] %vm402_vm0, %v1521_v23 }
 0x27e   : > { %v1780_v25 = vpop.f32.mrf.mxu0 }
 0x27f   : > { %v1478_v10 = vadd.f32 %v1780_v25, %v1688_v55 }
 0x280   : > { %v1469_v62 = vpop.f32.mrf.mxu0 }
 0x281   : > { %1534 = vst.msk [vmem:[%s3343_s20 + $0x10] sm:$0xff] %vm402_vm0, %v1478_v10  ;;  %v1470_v44 = vadd.f32 %v1688_v55, %v1469_v62 }
 0x282   : > { %v1781_v38 = vpop.f32.mrf.mxu0 }
 0x283   : > { %1532 = vst.msk [vmem:[%s3343_s20] sm:$0xff] %vm402_vm0, %v1470_v44  ;;  %v1481_v63 = vadd.f32 %v1781_v38, %v1688_v55 }
 0x284   : > { %v1472_v36 = vpop.f32.mrf.mxu0 }
 0x285   : > { %1535 = vst.msk [vmem:[%s3343_s20 + $0x18] sm:$0xff] %vm402_vm0, %v1481_v63  ;;  %v1473_v41 = vadd.f32 %v1688_v55, %v1472_v36 }
 0x287   : > { %1533 = vst.msk [vmem:[%s3343_s20 + $0x8] sm:$0xff] %vm402_vm0, %v1473_v41 }
 0x288   : > { %1988 = shalt.err (!%p1985_p11)
}
 0x289   : > { %s1989_s13 = scalar_lea.hbm %s3379_s28, 2048  ;;  %s1993_s23 = scalar_lea.hbm %s3447_s7, 8192 }
 0x28a   : > { %p1990_p12 = scmp.ne.s32.totalorder %s3379_s28, %s1989_s13  ;;  %p1994_p1 = scmp.lt.s32.totalorder %s3379_s28, %s3447_s7 }
 0x28b   : > { %p1995_p2 = scmp.lt.s32.totalorder %s1993_s23, %s1989_s13 }
 0x28c   : > { %p1991_p13 = pnand %p1990_p12, %p2163_p3 }
 0x28d   : > { %p1996_p4 = por %p1995_p2, %p1994_p1 }
 0x28e   : > { %p1992_p0 = pneg %p1991_p13 }
 0x290   : > { %p1997_p5 = pnand %p1996_p4, %p1992_p0 }
 0x292   : > { %2000 = shalt.err (!%p1997_p5)
}
 0x293   : > { %s2070_s11 = smov 128   ;;  %s2071_s16 = smov 8  }
 0x294   : > { %1810 = dma.vmem_to_hbm [thread:$0]  (%p2163_p3), %s3381_s10, 2048, %s3379_s28, %s3389_s12, %s2070_s11, %s2070_s11, %s2071_s16  }
 0x295 PF: > { %p1816_p6 = scmp.ge.s32.totalorder %s2067_s8, 2  ;;  %s1580_s17 = sand.u32 1, %s2039_s24  }
 0x296   : > { %s1581_s18 = scalar_lea.sflag [#allocation3], %s1580_s17 }
 0x297   : > { %p1813_p7 = pnand %p1816_p6, %p2172_p8 }
 0x299   : > { %p1814_p9 = pneg %p1813_p7 }
 0x29b   : > { %2034 = dma.done.wait (%p1814_p9), %s1581_s18, 2048  }
 0x29c   : > { %2036 = vsyncadd (%p1814_p9), %s1581_s18, 4294965248  ;;  %s20_s8 = sadd.s32 1, %s2067_s8   ;;  %s3587_s14 = sld [smem:[#allocation5_spill]] }
 0x29d   : > { %p17_p10 = scmp.ge.s32.totalorder %s20_s8, 6   ;;  %s3588_s10 = sld [smem:[#allocation6_spill]] }
 0x29e   : > { %s3589_s24 = smov %s2043_s25  ;;  %s3590_s25 = smov %s2047_s26 }
 0x29f   : > { %s3591_s26 = smov %s2181_s19  ;;  %s3592_s27 = smov %s2059_s29 }
 0x2a0   : > { %s3593_s28 = smov %s2063_s30  ;;  %19 = sbr.rel (!%p17_p10) target bundleno = 5 (0x5), region = 86 }
 0x2a2   : > { %s3594_s29 = smov %s3587_s14 }
 0x2a3   : > { %s3595_s30 = smov %s3588_s10 }
 0x2a5   :  { %1586 = vsyncpa [#allocation3], 1 }
 0x2a6   :  { %1588 = vsyncpa [#allocation3 + $0x1], 1 }

</bundles_post_ra>
